<compile_context>
chip_gen: v7x
topology: tpu7x:2x2x1
jax: 0.10.0
libtpu: 0.0.40
codegen_flags: <defaults>
</compile_context>

<pallas_src>
import jax
import jax.numpy as jnp
from jax import lax
from jax.experimental import pallas as pl
from jax.experimental.pallas import tpu as pltpu


# ----------------------------- Pallas kernel -----------------------------
def _bilstm_fused_kernel(idf_ref, idb_ref, table_ref, whh_ref, out_ref, xw_ref):
    """idf_ref : (C, n)     int32 char ids, forward time order.
       idb_ref : (C, n)     int32 char ids, reversed time order.
       table_ref:(2*Vp, 8H) projected table; rows [0,Vp) keep only forward-dir
                             columns, rows [Vp,2Vp) keep only backward-dir
                             columns (bias + 2x g-gate scale folded in).
       whh_ref : (2H, 8H)   block-diagonal recurrent weights (g cols pre-scaled).
       out_ref : (n, 2H)    final hidden states, layout [h_bwd | h_fwd].
       xw_ref  : (C, n, 8H) VMEM scratch for the gathered gate pre-activations."""
    C, n = idf_ref.shape
    Vp2, G = table_ref.shape
    Vp = Vp2 // 2
    H2 = whh_ref.shape[0]          # 2H

    # ---- one-shot in-kernel gather (off the serial path) -------------------
    # one-hot over [forward ids | reversed ids] x the direction-masked tables:
    #   xw[t] = table_fwd_only[idf[t]] + table_bwd_only[idb[t]]
    idf = idf_ref[...]
    idb = idb_ref[...]
    lane_v = lax.broadcasted_iota(jnp.int32, (C, n, Vp2), 2)
    target = jnp.where(lane_v < Vp, idf[:, :, None], idb[:, :, None] + Vp)
    onehot = (lane_v == target).astype(jnp.float32)            # (C, n, 2Vp)
    xw = jnp.dot(onehot.reshape(C * n, Vp2), table_ref[...],
                 preferred_element_type=jnp.float32)            # (C*n, 8H)
    xw_ref[...] = xw.reshape(C, n, G)

    # ---- recurrence ---------------------------------------------------------
    whh = whh_ref[...]
    # At larger H use native bf16 MXU operands (f32 accumulation & carries).
    use_bf16 = H2 >= 128
    whh_op = whh.astype(jnp.bfloat16) if use_bf16 else whh
    # TODO-free note: on v7x one could additionally hold W_hh in MXU weight regs
    # via pltpu.matmul_push_rhs/matmul_acc_lhs; kept portable here.

    # Independent row sub-blocks hide the serial matmul/EUP latency when n is
    # only a few vregs wide.
    if n >= 256 or n < 16:
        nsub = 1
    elif n % 32 == 0:
        nsub = 4
    elif n % 16 == 0:
        nsub = 2
    else:
        nsub = 1
    rows = n // nsub

    lane = lax.broadcasted_iota(jnp.int32, (rows, G), 1)
    g_mask = (lane >= 2 * H2) & (lane < 3 * H2)   # g-gate (tanh) columns

    zero = jnp.zeros((rows, H2), jnp.float32)
    carry0 = tuple((zero, zero) for _ in range(nsub))

    def body(t, carry):
        xw_t = xw_ref[t]                                        # (n, 8H)
        new = []
        for s in range(nsub):
            h, c = carry[s]
            x_s = xw_t[s * rows:(s + 1) * rows] if nsub > 1 else xw_t
            h_op = h.astype(whh_op.dtype)
            # Single fused matmul per chain per step (K = 2H, 8H-lane output).
            gates = x_s + jnp.dot(h_op, whh_op,
                                  preferred_element_type=jnp.float32)
            # ONE full-width transcendental on the EUP; g columns were
            # pre-scaled by 2, so tanh = 2*sigmoid - 1 is a cheap VPU fix-up.
            sg = jax.nn.sigmoid(gates)
            acts = jnp.where(g_mask, 2.0 * sg - 1.0, sg)
            i = acts[:, 0 * H2:1 * H2]
            f = acts[:, 1 * H2:2 * H2]
            g = acts[:, 2 * H2:3 * H2]
            o = acts[:, 3 * H2:4 * H2]
            c_new = f * c + i * g
            h_new = o * jnp.tanh(c_new)
            new.append((h_new, c_new))
        return tuple(new)

    # Fully unrolled — C is small & static; gives the scheduler cross-step and
    # cross-chain visibility.
    carry = lax.fori_loop(0, C, body, carry0, unroll=True)

    if nsub > 1:
        h_final = jnp.concatenate([carry[s][0] for s in range(nsub)], axis=0)
    else:
        h_final = carry[0][0]
    out_ref[...] = h_final


# ----------------------------- wrapper glue -----------------------------
def _interleave_gates(w_b, w_f, H):
    """Interleave per-gate column blocks of two (..., 4H) arrays into (..., 8H)
    laid out [i_b i_f | f_b f_f | g_b g_f | o_b o_f]."""
    lead = w_b.shape[:-1]
    wb = w_b.reshape(lead + (4, 1, H))
    wf = w_f.reshape(lead + (4, 1, H))
    return jnp.concatenate([wb, wf], axis=-2).reshape(lead + (8 * H,))


def fuse_bilstm_params(params, H):
    """Fold W_ih + bias into the embedding table, pre-scale the g-gate columns
    by 2 (tanh-via-sigmoid trick), build the block-diagonal recurrent weight,
    and split the projected table into direction-masked halves for the
    in-kernel gather."""
    wih_comb = _interleave_gates(params["wih_b"], params["wih_f"], H)  # (E, 8H)
    b_comb = _interleave_gates(params["b_b"], params["b_f"], H)        # (1, 8H)
    zeros = jnp.zeros_like(params["whh_b"])
    whh_top = _interleave_gates(params["whh_b"], zeros, H)   # rows = h_bwd
    whh_bot = _interleave_gates(zeros, params["whh_f"], H)   # rows = h_fwd
    whh_comb = jnp.concatenate([whh_top, whh_bot], axis=0)   # (2H, 8H)

    # tanh(x) = 2*sigmoid(2x) - 1  ->  fold the x2 into the g-gate columns.
    col = jnp.arange(8 * H)
    g_scale = jnp.where((col >= 4 * H) & (col < 6 * H), 2.0, 1.0)
    wih_comb = wih_comb * g_scale
    b_comb = b_comb * g_scale
    whh_comb = whh_comb * g_scale

    proj_table = params["embedding"] @ wih_comb + b_comb      # (vocab, 8H)

    vocab = proj_table.shape[0]
    Vp = max(64, -(-vocab // 64) * 64)           # 2*Vp is a multiple of 128
    tbl = jnp.pad(proj_table, ((0, Vp - vocab), (0, 0)))
    dir_idx = (col // H) % 2                      # 0 = backward col, 1 = forward
    fwd_mask = (dir_idx == 1).astype(tbl.dtype)
    bwd_mask = (dir_idx == 0).astype(tbl.dtype)
    # rows [0,Vp): forward columns only (indexed by ids[t]);
    # rows [Vp,2Vp): backward columns only (indexed by ids[C-1-t]).
    table_big = jnp.concatenate([tbl * fwd_mask, tbl * bwd_mask], axis=0)
    return table_big, whh_comb


def _num_tensorcores():
    """Best-effort TensorCores-per-chip detection (v7x has 2, v5e/v6e have 1)."""
    try:
        kind = jax.devices()[0].device_kind.lower()
        return 2 if ("v7" in kind or "7x" in kind) else 1
    except Exception:  # pragma: no cover
        return 1


def _pick_n_tile(N, C, G, cores=1, vmem_budget=24 * 1024 * 1024):
    """Largest VMEM-fitting row tile.  Single grid block on 1-TC chips (the grid
    is a serial loop there); only split N across blocks on 2-TC chips and only
    in multiples of 128 (BlockSpec lane constraint for the (C, n_tile) id
    blocks)."""
    per_row = 2 * C * G * 4 + 512          # xw scratch + one-hot staging + ids/out
    max_rows = max(8, (vmem_budget // per_row) // 8 * 8)
    want_split = cores >= 2 and N >= 256
    if N <= max_rows and not want_split:
        return N
    target = min(N, max_rows)
    if want_split:
        target = min(target, max(128, ((N // cores) // 128) * 128))
    cand = (target // 128) * 128
    while cand >= 128:
        if N % cand == 0:
            return cand
        cand -= 128
    return N


def bilstm_final_hidden(ids_fwd, ids_bwd, table_big, whh_comb):
    """ids_fwd/ids_bwd: (C, N) int32; returns (N, 2H) = [h_bwd | h_fwd]."""
    C, N = ids_fwd.shape
    Vp2, G = table_big.shape
    H2 = whh_comb.shape[0]
    n_tile = _pick_n_tile(N, C, G, cores=_num_tensorcores())
    grid = (N // n_tile,)

    return pl.pallas_call(
        _bilstm_fused_kernel,
        out_shape=jax.ShapeDtypeStruct((N, H2), jnp.float32),
        grid=grid,
        in_specs=[
            pl.BlockSpec((C, n_tile), lambda i: (0, i)),     # forward ids
            pl.BlockSpec((C, n_tile), lambda i: (0, i)),     # reversed ids
            pl.BlockSpec((Vp2, G), lambda i: (0, 0)),        # projected table
            pl.BlockSpec((H2, G), lambda i: (0, 0)),         # recurrent weights
        ],
        out_specs=pl.BlockSpec((n_tile, H2), lambda i: (i, 0)),
        scratch_shapes=[pltpu.VMEM((C, n_tile, G), jnp.float32)],
        compiler_params=pltpu.CompilerParams(
            dimension_semantics=("parallel",)),
    )(ids_fwd, ids_bwd, table_big, whh_comb)


def init_params(key, vocab_size, embedding_dim, hidden_dim):
    """Deterministic synthetic parameters matching the PyTorch module's shapes."""
    keys = jax.random.split(key, 9)
    scale_emb = float(jnp.sqrt(3.0 / embedding_dim))
    emb = jax.random.uniform(keys[0], (vocab_size, embedding_dim),
                             jnp.float32, -scale_emb, scale_emb)
    k = float(1.0 / jnp.sqrt(jnp.float32(hidden_dim)))

    def u(kk, shape):
        return jax.random.uniform(kk, shape, jnp.float32, -k, k)

    # PyTorch stores weight_ih (4H, E), weight_hh (4H, H), b_ih/b_hh (4H,).
    # We keep them transposed and fold the two biases together.
    return dict(
        embedding=emb,
        wih_f=u(keys[1], (embedding_dim, 4 * hidden_dim)),
        whh_f=u(keys[2], (hidden_dim, 4 * hidden_dim)),
        b_f=(u(keys[3], (4 * hidden_dim,))
             + u(keys[4], (4 * hidden_dim,))).reshape(1, -1),
        wih_b=u(keys[5], (embedding_dim, 4 * hidden_dim)),
        whh_b=u(keys[6], (hidden_dim, 4 * hidden_dim)),
        b_b=(u(keys[7], (4 * hidden_dim,))
             + u(keys[8], (4 * hidden_dim,))).reshape(1, -1),
    )


def charbilstm_forward(x_ids, params, hidden_dim):
    """x_ids: (batch, seq_len, char_len) int32 character ids."""
    B, S, C = x_ids.shape
    N = B * S
    H = hidden_dim

    table_big, whh_comb = fuse_bilstm_params(params, H)

    ids = x_ids.reshape(N, C).astype(jnp.int32)
    # Pad N to a multiple of 8 (sublane tiling) instead of asserting.
    N_pad = -(-N // 8) * 8
    if N_pad != N:
        ids = jnp.pad(ids, ((0, N_pad - N), (0, 0)))
    ids_fwd = ids.T                 # (C, N_pad)
    ids_bwd = ids_fwd[::-1]         # (C, N_pad): char order reversed (bwd dir)

    out = bilstm_final_hidden(ids_fwd, ids_bwd, table_big, whh_comb)
    out = out[:N]
    # nn.Dropout(p=0.1) is the identity in eval/inference mode.
    return out.reshape(B, S, 2 * H)


# ---------- pure-JAX reference for correctness checking ----------
def _lstm_ref_final_h(x_nce, wih, whh, b, H, reverse):
    N = x_nce.shape[0]
    xs = jnp.transpose(x_nce, (1, 0, 2))
    if reverse:
        xs = xs[::-1]

    def step(carry, x_t):
        h, c = carry
        gates = x_t @ wih + h @ whh + b
        i = jax.nn.sigmoid(gates[:, :H])
        f = jax.nn.sigmoid(gates[:, H:2 * H])
        g = jnp.tanh(gates[:, 2 * H:3 * H])
        o = jax.nn.sigmoid(gates[:, 3 * H:])
        c = f * c + i * g
        h = o * jnp.tanh(c)
        return (h, c), None

    (h, _), _ = lax.scan(step,
                         (jnp.zeros((N, H), jnp.float32),
                          jnp.zeros((N, H), jnp.float32)), xs)
    return h


if __name__ == "__main__":
    key = jax.random.PRNGKey(0)
    B, S, C = 2, 8, 10               # batch, seq_len, char_len
    vocab_size, E, H = 40, 16, 32    # vocab, embedding_dim, hidden_dim

    kp, kx = jax.random.split(key)
    params = init_params(kp, vocab_size, E, H)
    x_ids = jax.random.randint(kx, (B, S, C), 0, vocab_size, dtype=jnp.int32)

    out = charbilstm_forward(x_ids, params, H)
    out = jax.block_until_ready(out)
    assert out.shape == (B, S, 2 * H)

    # Reference check (pure JAX scan, unfused params).
    emb = jnp.take(params["embedding"], x_ids.reshape(B * S, C), axis=0)
    h_f = _lstm_ref_final_h(emb, params["wih_f"], params["whh_f"],
                            params["b_f"], H, reverse=False)
    h_b = _lstm_ref_final_h(emb, params["wih_b"], params["whh_b"],
                            params["b_b"], H, reverse=True)
    ref = jnp.concatenate([h_b, h_f], axis=1).reshape(B, S, 2 * H)
    # Tolerance slightly loosened for the tanh = 2*sigmoid(2x)-1 rewrite.
    assert jnp.allclose(out, ref, atol=1e-3, rtol=1e-3), "mismatch vs reference"

    print("KERNEL_OK")
</pallas_src>

<mosaic_0001>
module attributes {stable_mosaic.version = 11 : i64} {
  func.func @_bilstm_fused_kernel(%arg0: i32, %arg1: memref<10x16xi32, #tpu.memory_space<vmem>>, %arg2: memref<10x16xi32, #tpu.memory_space<vmem>>, %arg3: memref<128x256xf32, #tpu.memory_space<vmem>>, %arg4: memref<64x256xf32, #tpu.memory_space<vmem>>, %arg5: memref<16x64xf32, #tpu.memory_space<vmem>>, %arg6: memref<10x16x256xf32, #tpu.memory_space<vmem>>) attributes {dimension_semantics = [#tpu.dimension_semantics<parallel>], iteration_bounds = array<i64: 1>, scalar_prefetch = 0 : i64, scratch_operands = 1 : i64, tpu.core_type = #tpu.core_type<tc>, window_params = [{transform_indices = @transform_0, window_bounds = array<i64: 10, 16>}, {transform_indices = @transform_1, window_bounds = array<i64: 10, 16>}, {pipeline_mode = #tpu.pipeline_mode<synchronous>, transform_indices = @transform_2, window_bounds = array<i64: 128, 256>}, {pipeline_mode = #tpu.pipeline_mode<synchronous>, transform_indices = @transform_3, window_bounds = array<i64: 64, 256>}, {transform_indices = @transform_4, window_bounds = array<i64: 16, 64>}]} {
    %c0 = arith.constant 0 : index
    %c0_0 = arith.constant 0 : index
    %0 = vector.load %arg1[%c0, %c0_0] : memref<10x16xi32, #tpu.memory_space<vmem>>, vector<10x16xi32>
    %c0_1 = arith.constant 0 : index
    %c0_2 = arith.constant 0 : index
    %1 = vector.load %arg2[%c0_1, %c0_2] : memref<10x16xi32, #tpu.memory_space<vmem>>, vector<10x16xi32>
    %2 = tpu.iota {dimensions = array<i32: 2>} : vector<10x16x128xi32>
    %c64_i32 = arith.constant 64 : i32
    %3 = vector.broadcast %c64_i32 : i32 to vector<10x16x128xi32>
    %4 = arith.cmpi slt, %2, %3 : vector<10x16x128xi32>
    %5 = vector.shape_cast %0 : vector<10x16xi32> to vector<10x16x1xi32>
    %6 = vector.shape_cast %1 : vector<10x16xi32> to vector<10x16x1xi32>
    %c64_i32_3 = arith.constant 64 : i32
    %7 = vector.broadcast %c64_i32_3 : i32 to vector<10x16x1xi32>
    %8 = arith.addi %6, %7 : vector<10x16x1xi32>
    %9 = vector.shape_cast %5 : vector<10x16x1xi32> to vector<10x16x1xi32>
    %10 = vector.broadcast %9 : vector<10x16x1xi32> to vector<10x16x128xi32>
    %11 = vector.shape_cast %8 : vector<10x16x1xi32> to vector<10x16x1xi32>
    %12 = vector.broadcast %11 : vector<10x16x1xi32> to vector<10x16x128xi32>
    %13 = arith.select %4, %10, %12 : vector<10x16x128xi1>, vector<10x16x128xi32>
    %14 = arith.cmpi eq, %2, %13 : vector<10x16x128xi32>
    %15 = arith.extui %14 : vector<10x16x128xi1> to vector<10x16x128xi32>
    %16 = arith.sitofp %15 : vector<10x16x128xi32> to vector<10x16x128xf32>
    %17 = vector.shape_cast %16 : vector<10x16x128xf32> to vector<160x128xf32>
    %c0_4 = arith.constant 0 : index
    %c0_5 = arith.constant 0 : index
    %18 = vector.load %arg3[%c0_4, %c0_5] : memref<128x256xf32, #tpu.memory_space<vmem>>, vector<128x256xf32>
    %cst = arith.constant dense<0.000000e+00> : vector<160x256xf32>
    %19 = tpu.matmul %17, %18, %cst {dimension_numbers = #tpu.dot_dimension_numbers<[1], [0], [0], [1], [0, 0, 1, 1], [], []>} : vector<160x128xf32>, vector<128x256xf32>, vector<160x256xf32> -> vector<160x256xf32>
    %20 = vector.shape_cast %19 : vector<160x256xf32> to vector<10x16x256xf32>
    %c0_6 = arith.constant 0 : index
    %c0_7 = arith.constant 0 : index
    %c0_8 = arith.constant 0 : index
    %21 = vector.load %arg6[%c0_6, %c0_7, %c0_8] : memref<10x16x256xf32, #tpu.memory_space<vmem>>, vector<10x16x256xf32>
    tpu.vector_store %arg6[%c0_6, %c0_7, %c0_8], %20 {strides = array<i32>} : memref<10x16x256xf32, #tpu.memory_space<vmem>>, vector<10x16x256xf32>,
    %c0_9 = arith.constant 0 : index
    %c0_10 = arith.constant 0 : index
    %22 = vector.load %arg4[%c0_9, %c0_10] : memref<64x256xf32, #tpu.memory_space<vmem>>, vector<64x256xf32>
    %23 = tpu.iota {dimensions = array<i32: 1>} : vector<8x256xi32>
    %c128_i32 = arith.constant 128 : i32
    %24 = vector.broadcast %c128_i32 : i32 to vector<8x256xi32>
    %25 = arith.cmpi sge, %23, %24 : vector<8x256xi32>
    %c192_i32 = arith.constant 192 : i32
    %26 = vector.broadcast %c192_i32 : i32 to vector<8x256xi32>
    %27 = arith.cmpi slt, %23, %26 : vector<8x256xi32>
    %28 = arith.andi %25, %27 : vector<8x256xi1>
    %cst_11 = arith.constant 0.000000e+00 : f32
    %29 = vector.broadcast %cst_11 : f32 to vector<8x64xf32>
    %c0_i32 = arith.constant 0 : i32
    %30 = arith.index_cast %c0_i32 : i32 to index
    %c0_12 = arith.constant 0 : index
    %c0_13 = arith.constant 0 : index
    %31 = vector.load %arg6[%30, %c0_12, %c0_13] : memref<10x16x256xf32, #tpu.memory_space<vmem>>, vector<1x16x256xf32>
    %32 = vector.shape_cast %31 : vector<1x16x256xf32> to vector<16x256xf32>
    %33 = vector.extract_strided_slice %32 {offsets = [0, 0], sizes = [8, 256], strides = [1, 1]} : vector<16x256xf32> to vector<8x256xf32>
    %cst_14 = arith.constant dense<0.000000e+00> : vector<8x256xf32>
    %34 = tpu.matmul %29, %22, %cst_14 {dimension_numbers = #tpu.dot_dimension_numbers<[1], [0], [0], [1], [0, 0, 1, 1], [], []>} : vector<8x64xf32>, vector<64x256xf32>, vector<8x256xf32> -> vector<8x256xf32>
    %35 = arith.addf %33, %34 : vector<8x256xf32>
    %36 = arith.negf %35 : vector<8x256xf32>
    %37 = math.exp %36 : vector<8x256xf32>
    %cst_15 = arith.constant 1.000000e+00 : f32
    %38 = vector.broadcast %cst_15 : f32 to vector<8x256xf32>
    %39 = arith.addf %38, %37 : vector<8x256xf32>
    %40 = arith.divf %38, %39 : vector<8x256xf32>
    %cst_16 = arith.constant 2.000000e+00 : f32
    %41 = vector.broadcast %cst_16 : f32 to vector<8x256xf32>
    %42 = arith.mulf %41, %40 : vector<8x256xf32>
    %cst_17 = arith.constant 1.000000e+00 : f32
    %43 = vector.broadcast %cst_17 : f32 to vector<8x256xf32>
    %44 = arith.subf %42, %43 : vector<8x256xf32>
    %45 = arith.select %28, %44, %40 : vector<8x256xi1>, vector<8x256xf32>
    %46 = vector.extract_strided_slice %45 {offsets = [0, 0], sizes = [8, 64], strides = [1, 1]} : vector<8x256xf32> to vector<8x64xf32>
    %47 = vector.extract_strided_slice %45 {offsets = [0, 64], sizes = [8, 64], strides = [1, 1]} : vector<8x256xf32> to vector<8x64xf32>
    %48 = vector.extract_strided_slice %45 {offsets = [0, 128], sizes = [8, 64], strides = [1, 1]} : vector<8x256xf32> to vector<8x64xf32>
    %49 = vector.extract_strided_slice %45 {offsets = [0, 192], sizes = [8, 64], strides = [1, 1]} : vector<8x256xf32> to vector<8x64xf32>
    %50 = arith.mulf %47, %29 : vector<8x64xf32>
    %51 = arith.mulf %46, %48 : vector<8x64xf32>
    %52 = arith.addf %50, %51 : vector<8x64xf32>
    %53 = math.tanh %52 : vector<8x64xf32>
    %54 = arith.mulf %49, %53 : vector<8x64xf32>
    %55 = vector.extract_strided_slice %32 {offsets = [8, 0], sizes = [8, 256], strides = [1, 1]} : vector<16x256xf32> to vector<8x256xf32>
    %cst_18 = arith.constant dense<0.000000e+00> : vector<8x256xf32>
    %56 = tpu.matmul %29, %22, %cst_18 {dimension_numbers = #tpu.dot_dimension_numbers<[1], [0], [0], [1], [0, 0, 1, 1], [], []>} : vector<8x64xf32>, vector<64x256xf32>, vector<8x256xf32> -> vector<8x256xf32>
    %57 = arith.addf %55, %56 : vector<8x256xf32>
    %58 = arith.negf %57 : vector<8x256xf32>
    %59 = math.exp %58 : vector<8x256xf32>
    %cst_19 = arith.constant 1.000000e+00 : f32
    %60 = vector.broadcast %cst_19 : f32 to vector<8x256xf32>
    %61 = arith.addf %60, %59 : vector<8x256xf32>
    %62 = arith.divf %60, %61 : vector<8x256xf32>
    %cst_20 = arith.constant 2.000000e+00 : f32
    %63 = vector.broadcast %cst_20 : f32 to vector<8x256xf32>
    %64 = arith.mulf %63, %62 : vector<8x256xf32>
    %cst_21 = arith.constant 1.000000e+00 : f32
    %65 = vector.broadcast %cst_21 : f32 to vector<8x256xf32>
    %66 = arith.subf %64, %65 : vector<8x256xf32>
    %67 = arith.select %28, %66, %62 : vector<8x256xi1>, vector<8x256xf32>
    %68 = vector.extract_strided_slice %67 {offsets = [0, 0], sizes = [8, 64], strides = [1, 1]} : vector<8x256xf32> to vector<8x64xf32>
    %69 = vector.extract_strided_slice %67 {offsets = [0, 64], sizes = [8, 64], strides = [1, 1]} : vector<8x256xf32> to vector<8x64xf32>
    %70 = vector.extract_strided_slice %67 {offsets = [0, 128], sizes = [8, 64], strides = [1, 1]} : vector<8x256xf32> to vector<8x64xf32>
    %71 = vector.extract_strided_slice %67 {offsets = [0, 192], sizes = [8, 64], strides = [1, 1]} : vector<8x256xf32> to vector<8x64xf32>
    %72 = arith.mulf %69, %29 : vector<8x64xf32>
    %73 = arith.mulf %68, %70 : vector<8x64xf32>
    %74 = arith.addf %72, %73 : vector<8x64xf32>
    %75 = math.tanh %74 : vector<8x64xf32>
    %76 = arith.mulf %71, %75 : vector<8x64xf32>
    %c1_i32 = arith.constant 1 : i32
    %77 = arith.index_cast %c1_i32 : i32 to index
    %c0_22 = arith.constant 0 : index
    %c0_23 = arith.constant 0 : index
    %78 = vector.load %arg6[%77, %c0_22, %c0_23] : memref<10x16x256xf32, #tpu.memory_space<vmem>>, vector<1x16x256xf32>
    %79 = vector.shape_cast %78 : vector<1x16x256xf32> to vector<16x256xf32>
    %80 = vector.extract_strided_slice %79 {offsets = [0, 0], sizes = [8, 256], strides = [1, 1]} : vector<16x256xf32> to vector<8x256xf32>
    %cst_24 = arith.constant dense<0.000000e+00> : vector<8x256xf32>
    %81 = tpu.matmul %54, %22, %cst_24 {dimension_numbers = #tpu.dot_dimension_numbers<[1], [0], [0], [1], [0, 0, 1, 1], [], []>} : vector<8x64xf32>, vector<64x256xf32>, vector<8x256xf32> -> vector<8x256xf32>
    %82 = arith.addf %80, %81 : vector<8x256xf32>
    %83 = arith.negf %82 : vector<8x256xf32>
    %84 = math.exp %83 : vector<8x256xf32>
    %cst_25 = arith.constant 1.000000e+00 : f32
    %85 = vector.broadcast %cst_25 : f32 to vector<8x256xf32>
    %86 = arith.addf %85, %84 : vector<8x256xf32>
    %87 = arith.divf %85, %86 : vector<8x256xf32>
    %cst_26 = arith.constant 2.000000e+00 : f32
    %88 = vector.broadcast %cst_26 : f32 to vector<8x256xf32>
    %89 = arith.mulf %88, %87 : vector<8x256xf32>
    %cst_27 = arith.constant 1.000000e+00 : f32
    %90 = vector.broadcast %cst_27 : f32 to vector<8x256xf32>
    %91 = arith.subf %89, %90 : vector<8x256xf32>
    %92 = arith.select %28, %91, %87 : vector<8x256xi1>, vector<8x256xf32>
    %93 = vector.extract_strided_slice %92 {offsets = [0, 0], sizes = [8, 64], strides = [1, 1]} : vector<8x256xf32> to vector<8x64xf32>
    %94 = vector.extract_strided_slice %92 {offsets = [0, 64], sizes = [8, 64], strides = [1, 1]} : vector<8x256xf32> to vector<8x64xf32>
    %95 = vector.extract_strided_slice %92 {offsets = [0, 128], sizes = [8, 64], strides = [1, 1]} : vector<8x256xf32> to vector<8x64xf32>
    %96 = vector.extract_strided_slice %92 {offsets = [0, 192], sizes = [8, 64], strides = [1, 1]} : vector<8x256xf32> to vector<8x64xf32>
    %97 = arith.mulf %94, %52 : vector<8x64xf32>
    %98 = arith.mulf %93, %95 : vector<8x64xf32>
    %99 = arith.addf %97, %98 : vector<8x64xf32>
    %100 = math.tanh %99 : vector<8x64xf32>
    %101 = arith.mulf %96, %100 : vector<8x64xf32>
    %102 = vector.extract_strided_slice %79 {offsets = [8, 0], sizes = [8, 256], strides = [1, 1]} : vector<16x256xf32> to vector<8x256xf32>
    %cst_28 = arith.constant dense<0.000000e+00> : vector<8x256xf32>
    %103 = tpu.matmul %76, %22, %cst_28 {dimension_numbers = #tpu.dot_dimension_numbers<[1], [0], [0], [1], [0, 0, 1, 1], [], []>} : vector<8x64xf32>, vector<64x256xf32>, vector<8x256xf32> -> vector<8x256xf32>
    %104 = arith.addf %102, %103 : vector<8x256xf32>
    %105 = arith.negf %104 : vector<8x256xf32>
    %106 = math.exp %105 : vector<8x256xf32>
    %cst_29 = arith.constant 1.000000e+00 : f32
    %107 = vector.broadcast %cst_29 : f32 to vector<8x256xf32>
    %108 = arith.addf %107, %106 : vector<8x256xf32>
    %109 = arith.divf %107, %108 : vector<8x256xf32>
    %cst_30 = arith.constant 2.000000e+00 : f32
    %110 = vector.broadcast %cst_30 : f32 to vector<8x256xf32>
    %111 = arith.mulf %110, %109 : vector<8x256xf32>
    %cst_31 = arith.constant 1.000000e+00 : f32
    %112 = vector.broadcast %cst_31 : f32 to vector<8x256xf32>
    %113 = arith.subf %111, %112 : vector<8x256xf32>
    %114 = arith.select %28, %113, %109 : vector<8x256xi1>, vector<8x256xf32>
    %115 = vector.extract_strided_slice %114 {offsets = [0, 0], sizes = [8, 64], strides = [1, 1]} : vector<8x256xf32> to vector<8x64xf32>
    %116 = vector.extract_strided_slice %114 {offsets = [0, 64], sizes = [8, 64], strides = [1, 1]} : vector<8x256xf32> to vector<8x64xf32>
    %117 = vector.extract_strided_slice %114 {offsets = [0, 128], sizes = [8, 64], strides = [1, 1]} : vector<8x256xf32> to vector<8x64xf32>
    %118 = vector.extract_strided_slice %114 {offsets = [0, 192], sizes = [8, 64], strides = [1, 1]} : vector<8x256xf32> to vector<8x64xf32>
    %119 = arith.mulf %116, %74 : vector<8x64xf32>
    %120 = arith.mulf %115, %117 : vector<8x64xf32>
    %121 = arith.addf %119, %120 : vector<8x64xf32>
    %122 = math.tanh %121 : vector<8x64xf32>
    %123 = arith.mulf %118, %122 : vector<8x64xf32>
    %c2_i32 = arith.constant 2 : i32
    %124 = arith.index_cast %c2_i32 : i32 to index
    %c0_32 = arith.constant 0 : index
    %c0_33 = arith.constant 0 : index
    %125 = vector.load %arg6[%124, %c0_32, %c0_33] : memref<10x16x256xf32, #tpu.memory_space<vmem>>, vector<1x16x256xf32>
    %126 = vector.shape_cast %125 : vector<1x16x256xf32> to vector<16x256xf32>
    %127 = vector.extract_strided_slice %126 {offsets = [0, 0], sizes = [8, 256], strides = [1, 1]} : vector<16x256xf32> to vector<8x256xf32>
    %cst_34 = arith.constant dense<0.000000e+00> : vector<8x256xf32>
    %128 = tpu.matmul %101, %22, %cst_34 {dimension_numbers = #tpu.dot_dimension_numbers<[1], [0], [0], [1], [0, 0, 1, 1], [], []>} : vector<8x64xf32>, vector<64x256xf32>, vector<8x256xf32> -> vector<8x256xf32>
    %129 = arith.addf %127, %128 : vector<8x256xf32>
    %130 = arith.negf %129 : vector<8x256xf32>
    %131 = math.exp %130 : vector<8x256xf32>
    %cst_35 = arith.constant 1.000000e+00 : f32
    %132 = vector.broadcast %cst_35 : f32 to vector<8x256xf32>
    %133 = arith.addf %132, %131 : vector<8x256xf32>
    %134 = arith.divf %132, %133 : vector<8x256xf32>
    %cst_36 = arith.constant 2.000000e+00 : f32
    %135 = vector.broadcast %cst_36 : f32 to vector<8x256xf32>
    %136 = arith.mulf %135, %134 : vector<8x256xf32>
    %cst_37 = arith.constant 1.000000e+00 : f32
    %137 = vector.broadcast %cst_37 : f32 to vector<8x256xf32>
    %138 = arith.subf %136, %137 : vector<8x256xf32>
    %139 = arith.select %28, %138, %134 : vector<8x256xi1>, vector<8x256xf32>
    %140 = vector.extract_strided_slice %139 {offsets = [0, 0], sizes = [8, 64], strides = [1, 1]} : vector<8x256xf32> to vector<8x64xf32>
    %141 = vector.extract_strided_slice %139 {offsets = [0, 64], sizes = [8, 64], strides = [1, 1]} : vector<8x256xf32> to vector<8x64xf32>
    %142 = vector.extract_strided_slice %139 {offsets = [0, 128], sizes = [8, 64], strides = [1, 1]} : vector<8x256xf32> to vector<8x64xf32>
    %143 = vector.extract_strided_slice %139 {offsets = [0, 192], sizes = [8, 64], strides = [1, 1]} : vector<8x256xf32> to vector<8x64xf32>
    %144 = arith.mulf %141, %99 : vector<8x64xf32>
    %145 = arith.mulf %140, %142 : vector<8x64xf32>
    %146 = arith.addf %144, %145 : vector<8x64xf32>
    %147 = math.tanh %146 : vector<8x64xf32>
    %148 = arith.mulf %143, %147 : vector<8x64xf32>
    %149 = vector.extract_strided_slice %126 {offsets = [8, 0], sizes = [8, 256], strides = [1, 1]} : vector<16x256xf32> to vector<8x256xf32>
    %cst_38 = arith.constant dense<0.000000e+00> : vector<8x256xf32>
    %150 = tpu.matmul %123, %22, %cst_38 {dimension_numbers = #tpu.dot_dimension_numbers<[1], [0], [0], [1], [0, 0, 1, 1], [], []>} : vector<8x64xf32>, vector<64x256xf32>, vector<8x256xf32> -> vector<8x256xf32>
    %151 = arith.addf %149, %150 : vector<8x256xf32>
    %152 = arith.negf %151 : vector<8x256xf32>
    %153 = math.exp %152 : vector<8x256xf32>
    %cst_39 = arith.constant 1.000000e+00 : f32
    %154 = vector.broadcast %cst_39 : f32 to vector<8x256xf32>
    %155 = arith.addf %154, %153 : vector<8x256xf32>
    %156 = arith.divf %154, %155 : vector<8x256xf32>
    %cst_40 = arith.constant 2.000000e+00 : f32
    %157 = vector.broadcast %cst_40 : f32 to vector<8x256xf32>
    %158 = arith.mulf %157, %156 : vector<8x256xf32>
    %cst_41 = arith.constant 1.000000e+00 : f32
    %159 = vector.broadcast %cst_41 : f32 to vector<8x256xf32>
    %160 = arith.subf %158, %159 : vector<8x256xf32>
    %161 = arith.select %28, %160, %156 : vector<8x256xi1>, vector<8x256xf32>
    %162 = vector.extract_strided_slice %161 {offsets = [0, 0], sizes = [8, 64], strides = [1, 1]} : vector<8x256xf32> to vector<8x64xf32>
    %163 = vector.extract_strided_slice %161 {offsets = [0, 64], sizes = [8, 64], strides = [1, 1]} : vector<8x256xf32> to vector<8x64xf32>
    %164 = vector.extract_strided_slice %161 {offsets = [0, 128], sizes = [8, 64], strides = [1, 1]} : vector<8x256xf32> to vector<8x64xf32>
    %165 = vector.extract_strided_slice %161 {offsets = [0, 192], sizes = [8, 64], strides = [1, 1]} : vector<8x256xf32> to vector<8x64xf32>
    %166 = arith.mulf %163, %121 : vector<8x64xf32>
    %167 = arith.mulf %162, %164 : vector<8x64xf32>
    %168 = arith.addf %166, %167 : vector<8x64xf32>
    %169 = math.tanh %168 : vector<8x64xf32>
    %170 = arith.mulf %165, %169 : vector<8x64xf32>
    %c3_i32 = arith.constant 3 : i32
    %171 = arith.index_cast %c3_i32 : i32 to index
    %c0_42 = arith.constant 0 : index
    %c0_43 = arith.constant 0 : index
    %172 = vector.load %arg6[%171, %c0_42, %c0_43] : memref<10x16x256xf32, #tpu.memory_space<vmem>>, vector<1x16x256xf32>
    %173 = vector.shape_cast %172 : vector<1x16x256xf32> to vector<16x256xf32>
    %174 = vector.extract_strided_slice %173 {offsets = [0, 0], sizes = [8, 256], strides = [1, 1]} : vector<16x256xf32> to vector<8x256xf32>
    %cst_44 = arith.constant dense<0.000000e+00> : vector<8x256xf32>
    %175 = tpu.matmul %148, %22, %cst_44 {dimension_numbers = #tpu.dot_dimension_numbers<[1], [0], [0], [1], [0, 0, 1, 1], [], []>} : vector<8x64xf32>, vector<64x256xf32>, vector<8x256xf32> -> vector<8x256xf32>
    %176 = arith.addf %174, %175 : vector<8x256xf32>
    %177 = arith.negf %176 : vector<8x256xf32>
    %178 = math.exp %177 : vector<8x256xf32>
    %cst_45 = arith.constant 1.000000e+00 : f32
    %179 = vector.broadcast %cst_45 : f32 to vector<8x256xf32>
    %180 = arith.addf %179, %178 : vector<8x256xf32>
    %181 = arith.divf %179, %180 : vector<8x256xf32>
    %cst_46 = arith.constant 2.000000e+00 : f32
    %182 = vector.broadcast %cst_46 : f32 to vector<8x256xf32>
    %183 = arith.mulf %182, %181 : vector<8x256xf32>
    %cst_47 = arith.constant 1.000000e+00 : f32
    %184 = vector.broadcast %cst_47 : f32 to vector<8x256xf32>
    %185 = arith.subf %183, %184 : vector<8x256xf32>
    %186 = arith.select %28, %185, %181 : vector<8x256xi1>, vector<8x256xf32>
    %187 = vector.extract_strided_slice %186 {offsets = [0, 0], sizes = [8, 64], strides = [1, 1]} : vector<8x256xf32> to vector<8x64xf32>
    %188 = vector.extract_strided_slice %186 {offsets = [0, 64], sizes = [8, 64], strides = [1, 1]} : vector<8x256xf32> to vector<8x64xf32>
    %189 = vector.extract_strided_slice %186 {offsets = [0, 128], sizes = [8, 64], strides = [1, 1]} : vector<8x256xf32> to vector<8x64xf32>
    %190 = vector.extract_strided_slice %186 {offsets = [0, 192], sizes = [8, 64], strides = [1, 1]} : vector<8x256xf32> to vector<8x64xf32>
    %191 = arith.mulf %188, %146 : vector<8x64xf32>
    %192 = arith.mulf %187, %189 : vector<8x64xf32>
    %193 = arith.addf %191, %192 : vector<8x64xf32>
    %194 = math.tanh %193 : vector<8x64xf32>
    %195 = arith.mulf %190, %194 : vector<8x64xf32>
    %196 = vector.extract_strided_slice %173 {offsets = [8, 0], sizes = [8, 256], strides = [1, 1]} : vector<16x256xf32> to vector<8x256xf32>
    %cst_48 = arith.constant dense<0.000000e+00> : vector<8x256xf32>
    %197 = tpu.matmul %170, %22, %cst_48 {dimension_numbers = #tpu.dot_dimension_numbers<[1], [0], [0], [1], [0, 0, 1, 1], [], []>} : vector<8x64xf32>, vector<64x256xf32>, vector<8x256xf32> -> vector<8x256xf32>
    %198 = arith.addf %196, %197 : vector<8x256xf32>
    %199 = arith.negf %198 : vector<8x256xf32>
    %200 = math.exp %199 : vector<8x256xf32>
    %cst_49 = arith.constant 1.000000e+00 : f32
    %201 = vector.broadcast %cst_49 : f32 to vector<8x256xf32>
    %202 = arith.addf %201, %200 : vector<8x256xf32>
    %203 = arith.divf %201, %202 : vector<8x256xf32>
    %cst_50 = arith.constant 2.000000e+00 : f32
    %204 = vector.broadcast %cst_50 : f32 to vector<8x256xf32>
    %205 = arith.mulf %204, %203 : vector<8x256xf32>
    %cst_51 = arith.constant 1.000000e+00 : f32
    %206 = vector.broadcast %cst_51 : f32 to vector<8x256xf32>
    %207 = arith.subf %205, %206 : vector<8x256xf32>
    %208 = arith.select %28, %207, %203 : vector<8x256xi1>, vector<8x256xf32>
    %209 = vector.extract_strided_slice %208 {offsets = [0, 0], sizes = [8, 64], strides = [1, 1]} : vector<8x256xf32> to vector<8x64xf32>
    %210 = vector.extract_strided_slice %208 {offsets = [0, 64], sizes = [8, 64], strides = [1, 1]} : vector<8x256xf32> to vector<8x64xf32>
    %211 = vector.extract_strided_slice %208 {offsets = [0, 128], sizes = [8, 64], strides = [1, 1]} : vector<8x256xf32> to vector<8x64xf32>
    %212 = vector.extract_strided_slice %208 {offsets = [0, 192], sizes = [8, 64], strides = [1, 1]} : vector<8x256xf32> to vector<8x64xf32>
    %213 = arith.mulf %210, %168 : vector<8x64xf32>
    %214 = arith.mulf %209, %211 : vector<8x64xf32>
    %215 = arith.addf %213, %214 : vector<8x64xf32>
    %216 = math.tanh %215 : vector<8x64xf32>
    %217 = arith.mulf %212, %216 : vector<8x64xf32>
    %c4_i32 = arith.constant 4 : i32
    %218 = arith.index_cast %c4_i32 : i32 to index
    %c0_52 = arith.constant 0 : index
    %c0_53 = arith.constant 0 : index
    %219 = vector.load %arg6[%218, %c0_52, %c0_53] : memref<10x16x256xf32, #tpu.memory_space<vmem>>, vector<1x16x256xf32>
    %220 = vector.shape_cast %219 : vector<1x16x256xf32> to vector<16x256xf32>
    %221 = vector.extract_strided_slice %220 {offsets = [0, 0], sizes = [8, 256], strides = [1, 1]} : vector<16x256xf32> to vector<8x256xf32>
    %cst_54 = arith.constant dense<0.000000e+00> : vector<8x256xf32>
    %222 = tpu.matmul %195, %22, %cst_54 {dimension_numbers = #tpu.dot_dimension_numbers<[1], [0], [0], [1], [0, 0, 1, 1], [], []>} : vector<8x64xf32>, vector<64x256xf32>, vector<8x256xf32> -> vector<8x256xf32>
    %223 = arith.addf %221, %222 : vector<8x256xf32>
    %224 = arith.negf %223 : vector<8x256xf32>
    %225 = math.exp %224 : vector<8x256xf32>
    %cst_55 = arith.constant 1.000000e+00 : f32
    %226 = vector.broadcast %cst_55 : f32 to vector<8x256xf32>
    %227 = arith.addf %226, %225 : vector<8x256xf32>
    %228 = arith.divf %226, %227 : vector<8x256xf32>
    %cst_56 = arith.constant 2.000000e+00 : f32
    %229 = vector.broadcast %cst_56 : f32 to vector<8x256xf32>
    %230 = arith.mulf %229, %228 : vector<8x256xf32>
    %cst_57 = arith.constant 1.000000e+00 : f32
    %231 = vector.broadcast %cst_57 : f32 to vector<8x256xf32>
    %232 = arith.subf %230, %231 : vector<8x256xf32>
    %233 = arith.select %28, %232, %228 : vector<8x256xi1>, vector<8x256xf32>
    %234 = vector.extract_strided_slice %233 {offsets = [0, 0], sizes = [8, 64], strides = [1, 1]} : vector<8x256xf32> to vector<8x64xf32>
    %235 = vector.extract_strided_slice %233 {offsets = [0, 64], sizes = [8, 64], strides = [1, 1]} : vector<8x256xf32> to vector<8x64xf32>
    %236 = vector.extract_strided_slice %233 {offsets = [0, 128], sizes = [8, 64], strides = [1, 1]} : vector<8x256xf32> to vector<8x64xf32>
    %237 = vector.extract_strided_slice %233 {offsets = [0, 192], sizes = [8, 64], strides = [1, 1]} : vector<8x256xf32> to vector<8x64xf32>
    %238 = arith.mulf %235, %193 : vector<8x64xf32>
    %239 = arith.mulf %234, %236 : vector<8x64xf32>
    %240 = arith.addf %238, %239 : vector<8x64xf32>
    %241 = math.tanh %240 : vector<8x64xf32>
    %242 = arith.mulf %237, %241 : vector<8x64xf32>
    %243 = vector.extract_strided_slice %220 {offsets = [8, 0], sizes = [8, 256], strides = [1, 1]} : vector<16x256xf32> to vector<8x256xf32>
    %cst_58 = arith.constant dense<0.000000e+00> : vector<8x256xf32>
    %244 = tpu.matmul %217, %22, %cst_58 {dimension_numbers = #tpu.dot_dimension_numbers<[1], [0], [0], [1], [0, 0, 1, 1], [], []>} : vector<8x64xf32>, vector<64x256xf32>, vector<8x256xf32> -> vector<8x256xf32>
    %245 = arith.addf %243, %244 : vector<8x256xf32>
    %246 = arith.negf %245 : vector<8x256xf32>
    %247 = math.exp %246 : vector<8x256xf32>
    %cst_59 = arith.constant 1.000000e+00 : f32
    %248 = vector.broadcast %cst_59 : f32 to vector<8x256xf32>
    %249 = arith.addf %248, %247 : vector<8x256xf32>
    %250 = arith.divf %248, %249 : vector<8x256xf32>
    %cst_60 = arith.constant 2.000000e+00 : f32
    %251 = vector.broadcast %cst_60 : f32 to vector<8x256xf32>
    %252 = arith.mulf %251, %250 : vector<8x256xf32>
    %cst_61 = arith.constant 1.000000e+00 : f32
    %253 = vector.broadcast %cst_61 : f32 to vector<8x256xf32>
    %254 = arith.subf %252, %253 : vector<8x256xf32>
    %255 = arith.select %28, %254, %250 : vector<8x256xi1>, vector<8x256xf32>
    %256 = vector.extract_strided_slice %255 {offsets = [0, 0], sizes = [8, 64], strides = [1, 1]} : vector<8x256xf32> to vector<8x64xf32>
    %257 = vector.extract_strided_slice %255 {offsets = [0, 64], sizes = [8, 64], strides = [1, 1]} : vector<8x256xf32> to vector<8x64xf32>
    %258 = vector.extract_strided_slice %255 {offsets = [0, 128], sizes = [8, 64], strides = [1, 1]} : vector<8x256xf32> to vector<8x64xf32>
    %259 = vector.extract_strided_slice %255 {offsets = [0, 192], sizes = [8, 64], strides = [1, 1]} : vector<8x256xf32> to vector<8x64xf32>
    %260 = arith.mulf %257, %215 : vector<8x64xf32>
    %261 = arith.mulf %256, %258 : vector<8x64xf32>
    %262 = arith.addf %260, %261 : vector<8x64xf32>
    %263 = math.tanh %262 : vector<8x64xf32>
    %264 = arith.mulf %259, %263 : vector<8x64xf32>
    %c5_i32 = arith.constant 5 : i32
    %265 = arith.index_cast %c5_i32 : i32 to index
    %c0_62 = arith.constant 0 : index
    %c0_63 = arith.constant 0 : index
    %266 = vector.load %arg6[%265, %c0_62, %c0_63] : memref<10x16x256xf32, #tpu.memory_space<vmem>>, vector<1x16x256xf32>
    %267 = vector.shape_cast %266 : vector<1x16x256xf32> to vector<16x256xf32>
    %268 = vector.extract_strided_slice %267 {offsets = [0, 0], sizes = [8, 256], strides = [1, 1]} : vector<16x256xf32> to vector<8x256xf32>
    %cst_64 = arith.constant dense<0.000000e+00> : vector<8x256xf32>
    %269 = tpu.matmul %242, %22, %cst_64 {dimension_numbers = #tpu.dot_dimension_numbers<[1], [0], [0], [1], [0, 0, 1, 1], [], []>} : vector<8x64xf32>, vector<64x256xf32>, vector<8x256xf32> -> vector<8x256xf32>
    %270 = arith.addf %268, %269 : vector<8x256xf32>
    %271 = arith.negf %270 : vector<8x256xf32>
    %272 = math.exp %271 : vector<8x256xf32>
    %cst_65 = arith.constant 1.000000e+00 : f32
    %273 = vector.broadcast %cst_65 : f32 to vector<8x256xf32>
    %274 = arith.addf %273, %272 : vector<8x256xf32>
    %275 = arith.divf %273, %274 : vector<8x256xf32>
    %cst_66 = arith.constant 2.000000e+00 : f32
    %276 = vector.broadcast %cst_66 : f32 to vector<8x256xf32>
    %277 = arith.mulf %276, %275 : vector<8x256xf32>
    %cst_67 = arith.constant 1.000000e+00 : f32
    %278 = vector.broadcast %cst_67 : f32 to vector<8x256xf32>
    %279 = arith.subf %277, %278 : vector<8x256xf32>
    %280 = arith.select %28, %279, %275 : vector<8x256xi1>, vector<8x256xf32>
    %281 = vector.extract_strided_slice %280 {offsets = [0, 0], sizes = [8, 64], strides = [1, 1]} : vector<8x256xf32> to vector<8x64xf32>
    %282 = vector.extract_strided_slice %280 {offsets = [0, 64], sizes = [8, 64], strides = [1, 1]} : vector<8x256xf32> to vector<8x64xf32>
    %283 = vector.extract_strided_slice %280 {offsets = [0, 128], sizes = [8, 64], strides = [1, 1]} : vector<8x256xf32> to vector<8x64xf32>
    %284 = vector.extract_strided_slice %280 {offsets = [0, 192], sizes = [8, 64], strides = [1, 1]} : vector<8x256xf32> to vector<8x64xf32>
    %285 = arith.mulf %282, %240 : vector<8x64xf32>
    %286 = arith.mulf %281, %283 : vector<8x64xf32>
    %287 = arith.addf %285, %286 : vector<8x64xf32>
    %288 = math.tanh %287 : vector<8x64xf32>
    %289 = arith.mulf %284, %288 : vector<8x64xf32>
    %290 = vector.extract_strided_slice %267 {offsets = [8, 0], sizes = [8, 256], strides = [1, 1]} : vector<16x256xf32> to vector<8x256xf32>
    %cst_68 = arith.constant dense<0.000000e+00> : vector<8x256xf32>
    %291 = tpu.matmul %264, %22, %cst_68 {dimension_numbers = #tpu.dot_dimension_numbers<[1], [0], [0], [1], [0, 0, 1, 1], [], []>} : vector<8x64xf32>, vector<64x256xf32>, vector<8x256xf32> -> vector<8x256xf32>
    %292 = arith.addf %290, %291 : vector<8x256xf32>
    %293 = arith.negf %292 : vector<8x256xf32>
    %294 = math.exp %293 : vector<8x256xf32>
    %cst_69 = arith.constant 1.000000e+00 : f32
    %295 = vector.broadcast %cst_69 : f32 to vector<8x256xf32>
    %296 = arith.addf %295, %294 : vector<8x256xf32>
    %297 = arith.divf %295, %296 : vector<8x256xf32>
    %cst_70 = arith.constant 2.000000e+00 : f32
    %298 = vector.broadcast %cst_70 : f32 to vector<8x256xf32>
    %299 = arith.mulf %298, %297 : vector<8x256xf32>
    %cst_71 = arith.constant 1.000000e+00 : f32
    %300 = vector.broadcast %cst_71 : f32 to vector<8x256xf32>
    %301 = arith.subf %299, %300 : vector<8x256xf32>
    %302 = arith.select %28, %301, %297 : vector<8x256xi1>, vector<8x256xf32>
    %303 = vector.extract_strided_slice %302 {offsets = [0, 0], sizes = [8, 64], strides = [1, 1]} : vector<8x256xf32> to vector<8x64xf32>
    %304 = vector.extract_strided_slice %302 {offsets = [0, 64], sizes = [8, 64], strides = [1, 1]} : vector<8x256xf32> to vector<8x64xf32>
    %305 = vector.extract_strided_slice %302 {offsets = [0, 128], sizes = [8, 64], strides = [1, 1]} : vector<8x256xf32> to vector<8x64xf32>
    %306 = vector.extract_strided_slice %302 {offsets = [0, 192], sizes = [8, 64], strides = [1, 1]} : vector<8x256xf32> to vector<8x64xf32>
    %307 = arith.mulf %304, %262 : vector<8x64xf32>
    %308 = arith.mulf %303, %305 : vector<8x64xf32>
    %309 = arith.addf %307, %308 : vector<8x64xf32>
    %310 = math.tanh %309 : vector<8x64xf32>
    %311 = arith.mulf %306, %310 : vector<8x64xf32>
    %c6_i32 = arith.constant 6 : i32
    %312 = arith.index_cast %c6_i32 : i32 to index
    %c0_72 = arith.constant 0 : index
    %c0_73 = arith.constant 0 : index
    %313 = vector.load %arg6[%312, %c0_72, %c0_73] : memref<10x16x256xf32, #tpu.memory_space<vmem>>, vector<1x16x256xf32>
    %314 = vector.shape_cast %313 : vector<1x16x256xf32> to vector<16x256xf32>
    %315 = vector.extract_strided_slice %314 {offsets = [0, 0], sizes = [8, 256], strides = [1, 1]} : vector<16x256xf32> to vector<8x256xf32>
    %cst_74 = arith.constant dense<0.000000e+00> : vector<8x256xf32>
    %316 = tpu.matmul %289, %22, %cst_74 {dimension_numbers = #tpu.dot_dimension_numbers<[1], [0], [0], [1], [0, 0, 1, 1], [], []>} : vector<8x64xf32>, vector<64x256xf32>, vector<8x256xf32> -> vector<8x256xf32>
    %317 = arith.addf %315, %316 : vector<8x256xf32>
    %318 = arith.negf %317 : vector<8x256xf32>
    %319 = math.exp %318 : vector<8x256xf32>
    %cst_75 = arith.constant 1.000000e+00 : f32
    %320 = vector.broadcast %cst_75 : f32 to vector<8x256xf32>
    %321 = arith.addf %320, %319 : vector<8x256xf32>
    %322 = arith.divf %320, %321 : vector<8x256xf32>
    %cst_76 = arith.constant 2.000000e+00 : f32
    %323 = vector.broadcast %cst_76 : f32 to vector<8x256xf32>
    %324 = arith.mulf %323, %322 : vector<8x256xf32>
    %cst_77 = arith.constant 1.000000e+00 : f32
    %325 = vector.broadcast %cst_77 : f32 to vector<8x256xf32>
    %326 = arith.subf %324, %325 : vector<8x256xf32>
    %327 = arith.select %28, %326, %322 : vector<8x256xi1>, vector<8x256xf32>
    %328 = vector.extract_strided_slice %327 {offsets = [0, 0], sizes = [8, 64], strides = [1, 1]} : vector<8x256xf32> to vector<8x64xf32>
    %329 = vector.extract_strided_slice %327 {offsets = [0, 64], sizes = [8, 64], strides = [1, 1]} : vector<8x256xf32> to vector<8x64xf32>
    %330 = vector.extract_strided_slice %327 {offsets = [0, 128], sizes = [8, 64], strides = [1, 1]} : vector<8x256xf32> to vector<8x64xf32>
    %331 = vector.extract_strided_slice %327 {offsets = [0, 192], sizes = [8, 64], strides = [1, 1]} : vector<8x256xf32> to vector<8x64xf32>
    %332 = arith.mulf %329, %287 : vector<8x64xf32>
    %333 = arith.mulf %328, %330 : vector<8x64xf32>
    %334 = arith.addf %332, %333 : vector<8x64xf32>
    %335 = math.tanh %334 : vector<8x64xf32>
    %336 = arith.mulf %331, %335 : vector<8x64xf32>
    %337 = vector.extract_strided_slice %314 {offsets = [8, 0], sizes = [8, 256], strides = [1, 1]} : vector<16x256xf32> to vector<8x256xf32>
    %cst_78 = arith.constant dense<0.000000e+00> : vector<8x256xf32>
    %338 = tpu.matmul %311, %22, %cst_78 {dimension_numbers = #tpu.dot_dimension_numbers<[1], [0], [0], [1], [0, 0, 1, 1], [], []>} : vector<8x64xf32>, vector<64x256xf32>, vector<8x256xf32> -> vector<8x256xf32>
    %339 = arith.addf %337, %338 : vector<8x256xf32>
    %340 = arith.negf %339 : vector<8x256xf32>
    %341 = math.exp %340 : vector<8x256xf32>
    %cst_79 = arith.constant 1.000000e+00 : f32
    %342 = vector.broadcast %cst_79 : f32 to vector<8x256xf32>
    %343 = arith.addf %342, %341 : vector<8x256xf32>
    %344 = arith.divf %342, %343 : vector<8x256xf32>
    %cst_80 = arith.constant 2.000000e+00 : f32
    %345 = vector.broadcast %cst_80 : f32 to vector<8x256xf32>
    %346 = arith.mulf %345, %344 : vector<8x256xf32>
    %cst_81 = arith.constant 1.000000e+00 : f32
    %347 = vector.broadcast %cst_81 : f32 to vector<8x256xf32>
    %348 = arith.subf %346, %347 : vector<8x256xf32>
    %349 = arith.select %28, %348, %344 : vector<8x256xi1>, vector<8x256xf32>
    %350 = vector.extract_strided_slice %349 {offsets = [0, 0], sizes = [8, 64], strides = [1, 1]} : vector<8x256xf32> to vector<8x64xf32>
    %351 = vector.extract_strided_slice %349 {offsets = [0, 64], sizes = [8, 64], strides = [1, 1]} : vector<8x256xf32> to vector<8x64xf32>
    %352 = vector.extract_strided_slice %349 {offsets = [0, 128], sizes = [8, 64], strides = [1, 1]} : vector<8x256xf32> to vector<8x64xf32>
    %353 = vector.extract_strided_slice %349 {offsets = [0, 192], sizes = [8, 64], strides = [1, 1]} : vector<8x256xf32> to vector<8x64xf32>
    %354 = arith.mulf %351, %309 : vector<8x64xf32>
    %355 = arith.mulf %350, %352 : vector<8x64xf32>
    %356 = arith.addf %354, %355 : vector<8x64xf32>
    %357 = math.tanh %356 : vector<8x64xf32>
    %358 = arith.mulf %353, %357 : vector<8x64xf32>
    %c7_i32 = arith.constant 7 : i32
    %359 = arith.index_cast %c7_i32 : i32 to index
    %c0_82 = arith.constant 0 : index
    %c0_83 = arith.constant 0 : index
    %360 = vector.load %arg6[%359, %c0_82, %c0_83] : memref<10x16x256xf32, #tpu.memory_space<vmem>>, vector<1x16x256xf32>
    %361 = vector.shape_cast %360 : vector<1x16x256xf32> to vector<16x256xf32>
    %362 = vector.extract_strided_slice %361 {offsets = [0, 0], sizes = [8, 256], strides = [1, 1]} : vector<16x256xf32> to vector<8x256xf32>
    %cst_84 = arith.constant dense<0.000000e+00> : vector<8x256xf32>
    %363 = tpu.matmul %336, %22, %cst_84 {dimension_numbers = #tpu.dot_dimension_numbers<[1], [0], [0], [1], [0, 0, 1, 1], [], []>} : vector<8x64xf32>, vector<64x256xf32>, vector<8x256xf32> -> vector<8x256xf32>
    %364 = arith.addf %362, %363 : vector<8x256xf32>
    %365 = arith.negf %364 : vector<8x256xf32>
    %366 = math.exp %365 : vector<8x256xf32>
    %cst_85 = arith.constant 1.000000e+00 : f32
    %367 = vector.broadcast %cst_85 : f32 to vector<8x256xf32>
    %368 = arith.addf %367, %366 : vector<8x256xf32>
    %369 = arith.divf %367, %368 : vector<8x256xf32>
    %cst_86 = arith.constant 2.000000e+00 : f32
    %370 = vector.broadcast %cst_86 : f32 to vector<8x256xf32>
    %371 = arith.mulf %370, %369 : vector<8x256xf32>
    %cst_87 = arith.constant 1.000000e+00 : f32
    %372 = vector.broadcast %cst_87 : f32 to vector<8x256xf32>
    %373 = arith.subf %371, %372 : vector<8x256xf32>
    %374 = arith.select %28, %373, %369 : vector<8x256xi1>, vector<8x256xf32>
    %375 = vector.extract_strided_slice %374 {offsets = [0, 0], sizes = [8, 64], strides = [1, 1]} : vector<8x256xf32> to vector<8x64xf32>
    %376 = vector.extract_strided_slice %374 {offsets = [0, 64], sizes = [8, 64], strides = [1, 1]} : vector<8x256xf32> to vector<8x64xf32>
    %377 = vector.extract_strided_slice %374 {offsets = [0, 128], sizes = [8, 64], strides = [1, 1]} : vector<8x256xf32> to vector<8x64xf32>
    %378 = vector.extract_strided_slice %374 {offsets = [0, 192], sizes = [8, 64], strides = [1, 1]} : vector<8x256xf32> to vector<8x64xf32>
    %379 = arith.mulf %376, %334 : vector<8x64xf32>
    %380 = arith.mulf %375, %377 : vector<8x64xf32>
    %381 = arith.addf %379, %380 : vector<8x64xf32>
    %382 = math.tanh %381 : vector<8x64xf32>
    %383 = arith.mulf %378, %382 : vector<8x64xf32>
    %384 = vector.extract_strided_slice %361 {offsets = [8, 0], sizes = [8, 256], strides = [1, 1]} : vector<16x256xf32> to vector<8x256xf32>
    %cst_88 = arith.constant dense<0.000000e+00> : vector<8x256xf32>
    %385 = tpu.matmul %358, %22, %cst_88 {dimension_numbers = #tpu.dot_dimension_numbers<[1], [0], [0], [1], [0, 0, 1, 1], [], []>} : vector<8x64xf32>, vector<64x256xf32>, vector<8x256xf32> -> vector<8x256xf32>
    %386 = arith.addf %384, %385 : vector<8x256xf32>
    %387 = arith.negf %386 : vector<8x256xf32>
    %388 = math.exp %387 : vector<8x256xf32>
    %cst_89 = arith.constant 1.000000e+00 : f32
    %389 = vector.broadcast %cst_89 : f32 to vector<8x256xf32>
    %390 = arith.addf %389, %388 : vector<8x256xf32>
    %391 = arith.divf %389, %390 : vector<8x256xf32>
    %cst_90 = arith.constant 2.000000e+00 : f32
    %392 = vector.broadcast %cst_90 : f32 to vector<8x256xf32>
    %393 = arith.mulf %392, %391 : vector<8x256xf32>
    %cst_91 = arith.constant 1.000000e+00 : f32
    %394 = vector.broadcast %cst_91 : f32 to vector<8x256xf32>
    %395 = arith.subf %393, %394 : vector<8x256xf32>
    %396 = arith.select %28, %395, %391 : vector<8x256xi1>, vector<8x256xf32>
    %397 = vector.extract_strided_slice %396 {offsets = [0, 0], sizes = [8, 64], strides = [1, 1]} : vector<8x256xf32> to vector<8x64xf32>
    %398 = vector.extract_strided_slice %396 {offsets = [0, 64], sizes = [8, 64], strides = [1, 1]} : vector<8x256xf32> to vector<8x64xf32>
    %399 = vector.extract_strided_slice %396 {offsets = [0, 128], sizes = [8, 64], strides = [1, 1]} : vector<8x256xf32> to vector<8x64xf32>
    %400 = vector.extract_strided_slice %396 {offsets = [0, 192], sizes = [8, 64], strides = [1, 1]} : vector<8x256xf32> to vector<8x64xf32>
    %401 = arith.mulf %398, %356 : vector<8x64xf32>
    %402 = arith.mulf %397, %399 : vector<8x64xf32>
    %403 = arith.addf %401, %402 : vector<8x64xf32>
    %404 = math.tanh %403 : vector<8x64xf32>
    %405 = arith.mulf %400, %404 : vector<8x64xf32>
    %c8_i32 = arith.constant 8 : i32
    %406 = arith.index_cast %c8_i32 : i32 to index
    %c0_92 = arith.constant 0 : index
    %c0_93 = arith.constant 0 : index
    %407 = vector.load %arg6[%406, %c0_92, %c0_93] : memref<10x16x256xf32, #tpu.memory_space<vmem>>, vector<1x16x256xf32>
    %408 = vector.shape_cast %407 : vector<1x16x256xf32> to vector<16x256xf32>
    %409 = vector.extract_strided_slice %408 {offsets = [0, 0], sizes = [8, 256], strides = [1, 1]} : vector<16x256xf32> to vector<8x256xf32>
    %cst_94 = arith.constant dense<0.000000e+00> : vector<8x256xf32>
    %410 = tpu.matmul %383, %22, %cst_94 {dimension_numbers = #tpu.dot_dimension_numbers<[1], [0], [0], [1], [0, 0, 1, 1], [], []>} : vector<8x64xf32>, vector<64x256xf32>, vector<8x256xf32> -> vector<8x256xf32>
    %411 = arith.addf %409, %410 : vector<8x256xf32>
    %412 = arith.negf %411 : vector<8x256xf32>
    %413 = math.exp %412 : vector<8x256xf32>
    %cst_95 = arith.constant 1.000000e+00 : f32
    %414 = vector.broadcast %cst_95 : f32 to vector<8x256xf32>
    %415 = arith.addf %414, %413 : vector<8x256xf32>
    %416 = arith.divf %414, %415 : vector<8x256xf32>
    %cst_96 = arith.constant 2.000000e+00 : f32
    %417 = vector.broadcast %cst_96 : f32 to vector<8x256xf32>
    %418 = arith.mulf %417, %416 : vector<8x256xf32>
    %cst_97 = arith.constant 1.000000e+00 : f32
    %419 = vector.broadcast %cst_97 : f32 to vector<8x256xf32>
    %420 = arith.subf %418, %419 : vector<8x256xf32>
    %421 = arith.select %28, %420, %416 : vector<8x256xi1>, vector<8x256xf32>
    %422 = vector.extract_strided_slice %421 {offsets = [0, 0], sizes = [8, 64], strides = [1, 1]} : vector<8x256xf32> to vector<8x64xf32>
    %423 = vector.extract_strided_slice %421 {offsets = [0, 64], sizes = [8, 64], strides = [1, 1]} : vector<8x256xf32> to vector<8x64xf32>
    %424 = vector.extract_strided_slice %421 {offsets = [0, 128], sizes = [8, 64], strides = [1, 1]} : vector<8x256xf32> to vector<8x64xf32>
    %425 = vector.extract_strided_slice %421 {offsets = [0, 192], sizes = [8, 64], strides = [1, 1]} : vector<8x256xf32> to vector<8x64xf32>
    %426 = arith.mulf %423, %381 : vector<8x64xf32>
    %427 = arith.mulf %422, %424 : vector<8x64xf32>
    %428 = arith.addf %426, %427 : vector<8x64xf32>
    %429 = math.tanh %428 : vector<8x64xf32>
    %430 = arith.mulf %425, %429 : vector<8x64xf32>
    %431 = vector.extract_strided_slice %408 {offsets = [8, 0], sizes = [8, 256], strides = [1, 1]} : vector<16x256xf32> to vector<8x256xf32>
    %cst_98 = arith.constant dense<0.000000e+00> : vector<8x256xf32>
    %432 = tpu.matmul %405, %22, %cst_98 {dimension_numbers = #tpu.dot_dimension_numbers<[1], [0], [0], [1], [0, 0, 1, 1], [], []>} : vector<8x64xf32>, vector<64x256xf32>, vector<8x256xf32> -> vector<8x256xf32>
    %433 = arith.addf %431, %432 : vector<8x256xf32>
    %434 = arith.negf %433 : vector<8x256xf32>
    %435 = math.exp %434 : vector<8x256xf32>
    %cst_99 = arith.constant 1.000000e+00 : f32
    %436 = vector.broadcast %cst_99 : f32 to vector<8x256xf32>
    %437 = arith.addf %436, %435 : vector<8x256xf32>
    %438 = arith.divf %436, %437 : vector<8x256xf32>
    %cst_100 = arith.constant 2.000000e+00 : f32
    %439 = vector.broadcast %cst_100 : f32 to vector<8x256xf32>
    %440 = arith.mulf %439, %438 : vector<8x256xf32>
    %cst_101 = arith.constant 1.000000e+00 : f32
    %441 = vector.broadcast %cst_101 : f32 to vector<8x256xf32>
    %442 = arith.subf %440, %441 : vector<8x256xf32>
    %443 = arith.select %28, %442, %438 : vector<8x256xi1>, vector<8x256xf32>
    %444 = vector.extract_strided_slice %443 {offsets = [0, 0], sizes = [8, 64], strides = [1, 1]} : vector<8x256xf32> to vector<8x64xf32>
    %445 = vector.extract_strided_slice %443 {offsets = [0, 64], sizes = [8, 64], strides = [1, 1]} : vector<8x256xf32> to vector<8x64xf32>
    %446 = vector.extract_strided_slice %443 {offsets = [0, 128], sizes = [8, 64], strides = [1, 1]} : vector<8x256xf32> to vector<8x64xf32>
    %447 = vector.extract_strided_slice %443 {offsets = [0, 192], sizes = [8, 64], strides = [1, 1]} : vector<8x256xf32> to vector<8x64xf32>
    %448 = arith.mulf %445, %403 : vector<8x64xf32>
    %449 = arith.mulf %444, %446 : vector<8x64xf32>
    %450 = arith.addf %448, %449 : vector<8x64xf32>
    %451 = math.tanh %450 : vector<8x64xf32>
    %452 = arith.mulf %447, %451 : vector<8x64xf32>
    %c9_i32 = arith.constant 9 : i32
    %453 = arith.index_cast %c9_i32 : i32 to index
    %c0_102 = arith.constant 0 : index
    %c0_103 = arith.constant 0 : index
    %454 = vector.load %arg6[%453, %c0_102, %c0_103] : memref<10x16x256xf32, #tpu.memory_space<vmem>>, vector<1x16x256xf32>
    %455 = vector.shape_cast %454 : vector<1x16x256xf32> to vector<16x256xf32>
    %456 = vector.extract_strided_slice %455 {offsets = [0, 0], sizes = [8, 256], strides = [1, 1]} : vector<16x256xf32> to vector<8x256xf32>
    %cst_104 = arith.constant dense<0.000000e+00> : vector<8x256xf32>
    %457 = tpu.matmul %430, %22, %cst_104 {dimension_numbers = #tpu.dot_dimension_numbers<[1], [0], [0], [1], [0, 0, 1, 1], [], []>} : vector<8x64xf32>, vector<64x256xf32>, vector<8x256xf32> -> vector<8x256xf32>
    %458 = arith.addf %456, %457 : vector<8x256xf32>
    %459 = arith.negf %458 : vector<8x256xf32>
    %460 = math.exp %459 : vector<8x256xf32>
    %cst_105 = arith.constant 1.000000e+00 : f32
    %461 = vector.broadcast %cst_105 : f32 to vector<8x256xf32>
    %462 = arith.addf %461, %460 : vector<8x256xf32>
    %463 = arith.divf %461, %462 : vector<8x256xf32>
    %cst_106 = arith.constant 2.000000e+00 : f32
    %464 = vector.broadcast %cst_106 : f32 to vector<8x256xf32>
    %465 = arith.mulf %464, %463 : vector<8x256xf32>
    %cst_107 = arith.constant 1.000000e+00 : f32
    %466 = vector.broadcast %cst_107 : f32 to vector<8x256xf32>
    %467 = arith.subf %465, %466 : vector<8x256xf32>
    %468 = arith.select %28, %467, %463 : vector<8x256xi1>, vector<8x256xf32>
    %469 = vector.extract_strided_slice %468 {offsets = [0, 0], sizes = [8, 64], strides = [1, 1]} : vector<8x256xf32> to vector<8x64xf32>
    %470 = vector.extract_strided_slice %468 {offsets = [0, 64], sizes = [8, 64], strides = [1, 1]} : vector<8x256xf32> to vector<8x64xf32>
    %471 = vector.extract_strided_slice %468 {offsets = [0, 128], sizes = [8, 64], strides = [1, 1]} : vector<8x256xf32> to vector<8x64xf32>
    %472 = vector.extract_strided_slice %468 {offsets = [0, 192], sizes = [8, 64], strides = [1, 1]} : vector<8x256xf32> to vector<8x64xf32>
    %473 = arith.mulf %470, %428 : vector<8x64xf32>
    %474 = arith.mulf %469, %471 : vector<8x64xf32>
    %475 = arith.addf %473, %474 : vector<8x64xf32>
    %476 = math.tanh %475 : vector<8x64xf32>
    %477 = arith.mulf %472, %476 : vector<8x64xf32>
    %478 = vector.extract_strided_slice %455 {offsets = [8, 0], sizes = [8, 256], strides = [1, 1]} : vector<16x256xf32> to vector<8x256xf32>
    %cst_108 = arith.constant dense<0.000000e+00> : vector<8x256xf32>
    %479 = tpu.matmul %452, %22, %cst_108 {dimension_numbers = #tpu.dot_dimension_numbers<[1], [0], [0], [1], [0, 0, 1, 1], [], []>} : vector<8x64xf32>, vector<64x256xf32>, vector<8x256xf32> -> vector<8x256xf32>
    %480 = arith.addf %478, %479 : vector<8x256xf32>
    %481 = arith.negf %480 : vector<8x256xf32>
    %482 = math.exp %481 : vector<8x256xf32>
    %cst_109 = arith.constant 1.000000e+00 : f32
    %483 = vector.broadcast %cst_109 : f32 to vector<8x256xf32>
    %484 = arith.addf %483, %482 : vector<8x256xf32>
    %485 = arith.divf %483, %484 : vector<8x256xf32>
    %cst_110 = arith.constant 2.000000e+00 : f32
    %486 = vector.broadcast %cst_110 : f32 to vector<8x256xf32>
    %487 = arith.mulf %486, %485 : vector<8x256xf32>
    %cst_111 = arith.constant 1.000000e+00 : f32
    %488 = vector.broadcast %cst_111 : f32 to vector<8x256xf32>
    %489 = arith.subf %487, %488 : vector<8x256xf32>
    %490 = arith.select %28, %489, %485 : vector<8x256xi1>, vector<8x256xf32>
    %491 = vector.extract_strided_slice %490 {offsets = [0, 0], sizes = [8, 64], strides = [1, 1]} : vector<8x256xf32> to vector<8x64xf32>
    %492 = vector.extract_strided_slice %490 {offsets = [0, 64], sizes = [8, 64], strides = [1, 1]} : vector<8x256xf32> to vector<8x64xf32>
    %493 = vector.extract_strided_slice %490 {offsets = [0, 128], sizes = [8, 64], strides = [1, 1]} : vector<8x256xf32> to vector<8x64xf32>
    %494 = vector.extract_strided_slice %490 {offsets = [0, 192], sizes = [8, 64], strides = [1, 1]} : vector<8x256xf32> to vector<8x64xf32>
    %495 = arith.mulf %492, %450 : vector<8x64xf32>
    %496 = arith.mulf %491, %493 : vector<8x64xf32>
    %497 = arith.addf %495, %496 : vector<8x64xf32>
    %498 = math.tanh %497 : vector<8x64xf32>
    %499 = arith.mulf %494, %498 : vector<8x64xf32>
    %c10_i32 = arith.constant 10 : i32
    %500 = tpu.concatenate %477, %499 in 0 : vector<8x64xf32>, vector<8x64xf32> -> vector<16x64xf32>
    %c0_112 = arith.constant 0 : index
    %c0_113 = arith.constant 0 : index
    %501 = vector.load %arg5[%c0_112, %c0_113] : memref<16x64xf32, #tpu.memory_space<vmem>>, vector<16x64xf32>
    tpu.vector_store %arg5[%c0_112, %c0_113], %500 {strides = array<i32>} : memref<16x64xf32, #tpu.memory_space<vmem>>, vector<16x64xf32>,
    return
  }
  func.func @transform_0(%arg0: i32) -> (i32, i32) {
    %c0_i32 = arith.constant 0 : i32
    %c0_i32_0 = arith.constant 0 : i32
    return %c0_i32, %arg0 : i32, i32
  }
  func.func @transform_1(%arg0: i32) -> (i32, i32) {
    %c0_i32 = arith.constant 0 : i32
    %c0_i32_0 = arith.constant 0 : i32
    return %c0_i32, %arg0 : i32, i32
  }
  func.func @transform_2(%arg0: i32) -> (i32, i32) {
    %c0_i32 = arith.constant 0 : i32
    %c0_i32_0 = arith.constant 0 : i32
    %c0_i32_1 = arith.constant 0 : i32
    return %c0_i32, %c0_i32_0 : i32, i32
  }
  func.func @transform_3(%arg0: i32) -> (i32, i32) {
    %c0_i32 = arith.constant 0 : i32
    %c0_i32_0 = arith.constant 0 : i32
    %c0_i32_1 = arith.constant 0 : i32
    return %c0_i32, %c0_i32_0 : i32, i32
  }
  func.func @transform_4(%arg0: i32) -> (i32, i32) {
    %c0_i32 = arith.constant 0 : i32
    %c0_i32_0 = arith.constant 0 : i32
    return %arg0, %c0_i32 : i32, i32
  }
}

</mosaic_0001>

<bundles_post_ra>
// kernel: tpu_custom_call.1
= control target key start
LH: loop header
LB: loop body
LE: loop exit
PB: predicated region body
PF: predicated region fallthrough
CT: control target
= control target key end

     0   :  { %9 = vsyncpa [#allocation4], 0  ;;  %s4323_s0 = inlined_call_operand.hbm [shape: s32[10,16], index: 0, kind: input, shape index: {}]   ;;  %s4324_s1 = inlined_call_operand.hbm [shape: s32[10,16], index: 1, kind: input, shape index: {}]   ;;  %s4325_s2 = inlined_call_operand.hbm [shape: f32[128,256], index: 2, kind: input, shape index: {}]   ;;  %s4326_s3 = inlined_call_operand.hbm [shape: f32[64,256], index: 3, kind: input, shape index: {}]   ;;  %s4327_s4 = inlined_call_operand.hbm [shape: f32[16,64], index: 4, kind: output, shape index: {}]  }
   0x1   :  { %10 = vsyncpa [#allocation7], 0 }
   0x2   :  { %11 = vsyncpa [#allocation10], 0 }
   0x3   :  { %12 = vsyncpa [#allocation5], 0  ;;  %s3621_s15 = smov [#allocation6]   ;;  %s3622_s17 = smov [#allocation3]  }
   0x4   :  { %s30_s16 = sshll.u32 %s3621_s15, 4  ;;  %s18_s18 = sshll.u32 %s3622_s17, 4  ;;  %s31_s16 = int_to_ptr.vmem [resolvable:$true] %s30_s16  ;;  %s3658_s18 = int_to_ptr.vmem [resolvable:$true] %s18_s18 }
   0x5   :  { %s3503_s21 = scalar_lea.hbm %s4324_s1, 256 }
   0x6   :  { %p3504_p0 = scmp.ne.s32.totalorder %s4324_s1, %s3503_s21  ;;  %p3507_p1 = scmp.lt.u32.totalorder %s3503_s21, %s4324_s1 }
   0x8   :  { %p3509_p2 = pnand %p3507_p1, %p3504_p0 }
   0xa   :  { %3512 = shalt.err (!%p3509_p2)
}
   0xb   :  { %s3513_s26 = scalar_lea.vmem %s31_s16, 256  ;;  %p3518_p4 = scmp.lt.s32.totalorder %s31_s16, %s31_s16 }
   0xc   :  { %p3514_p3 = scmp.ne.s32.totalorder %s31_s16, %s3513_s26  ;;  %p3519_p5 = scmp.lt.s32.totalorder %s3513_s26, %s3513_s26 }
   0xe   :  { %p3520_p6 = por %p3519_p5, %p3518_p4 }
  0x10   :  { %p3521_p7 = pnand %p3520_p6, %p3514_p3 }
  0x12   :  { %3524 = shalt.err (!%p3521_p7)
}
  0x13   :  { %s3623_s27 = smov 128   ;;  %s3624_s28 = smov 8  }
  0x14   :  { %36 = dma.hbm_to_vmem [thread:$0]  %s4324_s1, 256, %s31_s16, [#allocation7], %s3623_s27, %s3623_s27, %s3624_s28  }
  0x15   :  { %s3525_s7 = scalar_lea.hbm %s4323_s0, 256 }
  0x16   :  { %p3526_p8 = scmp.ne.s32.totalorder %s4323_s0, %s3525_s7  ;;  %p3529_p9 = scmp.lt.u32.totalorder %s3525_s7, %s4323_s0 }
  0x18   :  { %p3531_p10 = pnand %p3529_p9, %p3526_p8 }
  0x1a   :  { %3534 = shalt.err (!%p3531_p10)
}
  0x1b   :  { %s3535_s12 = scalar_lea.vmem %s3658_s18, 256  ;;  %p3540_p12 = scmp.lt.s32.totalorder %s3658_s18, %s3658_s18 }
  0x1c   :  { %p3536_p11 = scmp.ne.s32.totalorder %s3658_s18, %s3535_s12  ;;  %p3541_p13 = scmp.lt.s32.totalorder %s3535_s12, %s3535_s12 }
  0x1e   :  { %p3542_p0 = por %p3541_p13, %p3540_p12 }
  0x20   :  { %p3543_p1 = pnand %p3542_p0, %p3536_p11 }
  0x22   :  { %3546 = shalt.err (!%p3543_p1)
}
  0x23   :  { %24 = dma.hbm_to_vmem [thread:$0]  %s4323_s0, 256, %s3658_s18, [#allocation4], %s3623_s27, %s3623_s27, %s3624_s28  }
  0x24   :  { %s3625_s14 = smov [#allocation8]   ;;  %s3547_s19 = scalar_lea.hbm %s4325_s2, 4096 }
  0x25   :  { %s42_s15 = sshll.u32 %s3625_s14, 4  ;;  %p3548_p2 = scmp.ne.s32.totalorder %s4325_s2, %s3547_s19  ;;  %s43_s15 = int_to_ptr.vmem [resolvable:$true] %s42_s15 }
  0x26   :  { %p3551_p3 = scmp.lt.u32.totalorder %s3547_s19, %s4325_s2 }
  0x28   :  { %p3553_p4 = pnand %p3551_p3, %p3548_p2 }
  0x2a   :  { %3556 = shalt.err (!%p3553_p4)
}
  0x2b   :  { %s3557_s24 = scalar_lea.vmem %s43_s15, 4096  ;;  %p3562_p6 = scmp.lt.s32.totalorder %s43_s15, %s43_s15 }
  0x2c   :  { %p3558_p5 = scmp.ne.s32.totalorder %s43_s15, %s3557_s24  ;;  %p3563_p7 = scmp.lt.s32.totalorder %s3557_s24, %s3557_s24 }
  0x2e   :  { %p3564_p8 = por %p3563_p7, %p3562_p6 }
  0x30   :  { %p3565_p9 = pnand %p3564_p8, %p3558_p5 }
  0x32   :  { %3568 = shalt.err (!%p3565_p9)
}
  0x33   :  { %s3626_s0 = smov 256   ;;  %s3627_s18 = smov 16  }
  0x34   :  { %48 = dma.hbm_to_vmem [thread:$0]  %s4325_s2, 4096, %s43_s15, [#allocation7], %s3626_s0, %s3626_s0, %s3627_s18  }
  0x35   :  { %s3628_s29 = smov [#allocation9]   ;;  %s3569_s7 = scalar_lea.hbm %s4326_s3, 2048 }
  0x36   :  { %s54_s30 = sshll.u32 %s3628_s29, 4  ;;  %p3570_p10 = scmp.ne.s32.totalorder %s4326_s3, %s3569_s7  ;;  %s55_s30 = int_to_ptr.vmem [resolvable:$true] %s54_s30 }
  0x37   :  { %p3573_p11 = scmp.lt.u32.totalorder %s3569_s7, %s4326_s3 }
  0x39   :  { %p3575_p12 = pnand %p3573_p11, %p3570_p10 }
  0x3b   :  { %3578 = shalt.err (!%p3575_p12)
}
  0x3c   :  { %s3579_s12 = scalar_lea.vmem %s55_s30, 2048  ;;  %p3584_p0 = scmp.lt.s32.totalorder %s55_s30, %s55_s30 }
  0x3d   :  { %p3580_p13 = scmp.ne.s32.totalorder %s55_s30, %s3579_s12  ;;  %p3585_p1 = scmp.lt.s32.totalorder %s3579_s12, %s3579_s12 }
  0x3f   :  { %p3586_p2 = por %p3585_p1, %p3584_p0 }
  0x41   :  { %p3587_p3 = pnand %p3586_p2, %p3580_p13 }
  0x43   :  { %3590 = shalt.err (!%p3587_p3)
}
  0x44   :  { %60 = dma.hbm_to_vmem [thread:$0]  %s4326_s3, 2048, %s55_s30, [#allocation10], %s3626_s0, %s3626_s0, %s3627_s18  }
  0x45   :  { %3613 = dma.done.wait [#allocation4], 256  }
  0x46   :  { %3614 = vsyncadd [#allocation4], 4294967040 }
  0x47   :  { %3615 = dma.done.wait [#allocation7], 4352  }
  0x48   :  { %3616 = vsyncadd [#allocation7], 4294962944 }
  0x49   :  { %3617 = dma.done.wait [#allocation10], 2048  }
  0x4a   :  { %3618 = vsyncadd [#allocation10], 4294965248  ;;  %v77_v0 = vlaneseq  ;;  %v3629_v2 = vmov 0.0   ;;  %v3727_v4 = vld [vmem:[#allocation6] sm:$0xff]  ;;  %v3729_v5 = vld [vmem:[#allocation3] sm:$0xff]  ;;  %s3631_s3 = smov 64  }
  0x4b   :  { %496 = vmatprep.mubr.f32.mxu1 %v3629_v2  ;;  %1426 = vmatprep.mubr.f32.mxu0 %v3629_v2  ;;  %v401_v7 = vld [vmem:[#allocation8 + $0x8] sm:$0xff]  ;;  %v403_v8 = vld [vmem:[#allocation8 + $0x18] sm:$0xff]  ;;  %v400_v9 = vld [vmem:[#allocation8] sm:$0xff]  ;;  %s3632_s13 = smov [#allocation11]  }
  0x4c   :  { %v3720_v1 = vshrl.u32 %v77_v0, 7  ;;  %v402_v12 = vld [vmem:[#allocation8 + $0x10] sm:$0xff]  ;;  %v405_v13 = vld [vmem:[#allocation8 + $0x28] sm:$0xff]  ;;  %v407_v14 = vld [vmem:[#allocation8 + $0x38] sm:$0xff]  ;;  %v2919_v15 = vpack.c.bf16 %v403_v8, %v401_v7  ;;  %s2767_s14 = sshll.u32 %s3632_s13, 4  ;;  %s2768_s14 = int_to_ptr.vmem [resolvable:$true] %s2767_s14 }
  0x4d   :  { %v2921_v16 = vpack.c.bf16 %v402_v12, %v400_v9  ;;  %v2923_v17 = vpack.c.bf16 %v407_v14, %v405_v13  ;;  %v404_v18 = vld [vmem:[#allocation8 + $0x20] sm:$0xff]  ;;  %v406_v19 = vld [vmem:[#allocation8 + $0x30] sm:$0xff]  ;;  %v409_v22 = vld [vmem:[#allocation8 + $0x48] sm:$0xff]  ;;  %s3591_s15 = scalar_lea.vmem %s2768_s14, 256  ;;  %p3596_p5 = scmp.lt.s32.totalorder %s2768_s14, %s2768_s14 }
  0x4e   :  { %v3725_v3 = vsub.s32 0, %v3720_v1  ;;  %v3736_v11 = vsub.s32 1, %v3720_v1  ;;  %v411_v23 = vld [vmem:[#allocation8 + $0x58] sm:$0xff]  ;;  %2920 = vmatprep.subr.bf16.mxu1 %v2919_v15  ;;  %v2925_v24 = vpack.c.bf16 %v406_v19, %v404_v18  ;;  %v408_v26 = vld [vmem:[#allocation8 + $0x40] sm:$0xff]  ;;  %v410_v27 = vld [vmem:[#allocation8 + $0x50] sm:$0xff]  ;;  %v104_v28 = vsub.s32 2, %v3720_v1  ;;  %p3592_p4 = scmp.ne.s32.totalorder %s2768_s14, %s3591_s15  ;;  %p3597_p6 = scmp.lt.s32.totalorder %s3591_s15, %s3591_s15 }
  0x4f   :  { %2922 = vmatpush1.bf16.msra.mxu1 %v2921_v16  ;;  %v2927_v25 = vpack.c.bf16 %v411_v23, %v409_v22  ;;  %v413_v29 = vld [vmem:[#allocation8 + $0x68] sm:$0xff]  ;;  %v415_v30 = vld [vmem:[#allocation8 + $0x78] sm:$0xff]  ;;  %v657_v33 = vld [vmem:[#allocation9] sm:$0xff]  ;;  %v2929_v34 = vpack.c.bf16 %v410_v27, %v408_v26  ;;  %v115_v54 = vsub.s32 3, %v3720_v1  ;;  %v126_v13 = vsub.s32 4, %v3720_v1 }
  0x50   :  { %v193_v6 = vrot.slane %v3727_v4, %v3725_v3  ;;  %v83_v10 = vrot.slane %v3729_v5, %v3725_v3  ;;  %v204_v20 = vrot.slane %v3727_v4, %v3736_v11  ;;  %v94_v21 = vrot.slane %v3729_v5, %v3736_v11  ;;  %2924 = vmatprep.subr.bf16.mxu1 %v2923_v17  ;;  %v658_v31 = vld [vmem:[#allocation9 + $0x8] sm:$0xff]  ;;  %v660_v32 = vld [vmem:[#allocation9 + $0x18] sm:$0xff]  ;;  %v659_v35 = vld [vmem:[#allocation9 + $0x10] sm:$0xff]  ;;  %p3598_p7 = por %p3597_p6, %p3596_p5 }
  0x51   :  { %v662_v36 = vld [vmem:[#allocation9 + $0x28] sm:$0xff]  ;;  %v664_v37 = vld [vmem:[#allocation9 + $0x38] sm:$0xff]  ;;  %v2931_v38 = vpack.c.bf16 %v415_v30, %v413_v29  ;;  %v412_v39 = vld [vmem:[#allocation8 + $0x60] sm:$0xff]  ;;  %v3743_v41 = vpack.c.bf16 %v660_v32, %v658_v31  ;;  %v215_v42 = vrot.slane %v3727_v4, %v104_v28  ;;  %v105_v43 = vrot.slane %v3729_v5, %v104_v28 }
  0x52   :  { %195 = vbcast.lane.b32.xlu0 %v193_v6, 256  ;;  %199 = vbcast.lane.b32.xlu1 %v193_v6, 264  ;;  %v414_v40 = vld [vmem:[#allocation8 + $0x70] sm:$0xff]  ;;  %v417_v44 = vld [vmem:[#allocation8 + $0x88] sm:$0xff]  ;;  %v419_v45 = vld [vmem:[#allocation8 + $0x98] sm:$0xff]  ;;  %v3747_v46 = vpack.c.bf16 %v659_v35, %v657_v33  ;;  %v3749_v47 = vpack.c.bf16 %v664_v37, %v662_v36  ;;  %v226_v62 = vrot.slane %v3727_v4, %v115_v54  ;;  %v137_v26 = vsub.s32 5, %v3720_v1  ;;  %p3599_p8 = pnand %p3598_p7, %p3592_p4 }
  0x53   :  { %2926 = vmatpush1.bf16.msra.mxu1 %v2925_v24  ;;  %v661_v48 = vld [vmem:[#allocation9 + $0x20] sm:$0xff]  ;;  %v663_v49 = vld [vmem:[#allocation9 + $0x30] sm:$0xff]  ;;  %3048 = vmatprep.subr.bf16.mxu0 %v3743_v41  ;;  %v2933_v50 = vpack.c.bf16 %v414_v40, %v412_v39  ;;  %v2935_v51 = vpack.c.bf16 %v419_v45, %v417_v44  ;;  %v421_v55 = vld [vmem:[#allocation8 + $0xa8] sm:$0xff]  ;;  %v116_v63 = vrot.slane %v3729_v5, %v115_v54  ;;  %v148_v32 = vsub.s32 6, %v3720_v1 }
  0x54   :  { %2928 = vmatprep.subr.bf16.mxu1 %v2927_v25  ;;  %3050 = vmatpush1.bf16.msra.mxu0 %v3747_v46  ;;  %v416_v52 = vld [vmem:[#allocation8 + $0x80] sm:$0xff]  ;;  %v418_v53 = vld [vmem:[#allocation8 + $0x90] sm:$0xff]  ;;  %v423_v56 = vld [vmem:[#allocation8 + $0xb8] sm:$0xff]  ;;  %v3755_v57 = vpack.c.bf16 %v663_v49, %v661_v48  ;;  %v248_v30 = vrot.slane %v3727_v4, %v137_v26  ;;  %v138_v31 = vrot.slane %v3729_v5, %v137_v26  ;;  %v159_v35 = vsub.s32 7, %v3720_v1 }
  0x55   :  { %3052 = vmatprep.subr.bf16.mxu0 %v3749_v47  ;;  %v2937_v58 = vpack.c.bf16 %v418_v53, %v416_v52  ;;  %v2939_v59 = vpack.c.bf16 %v423_v56, %v421_v55  ;;  %v420_v60 = vld [vmem:[#allocation8 + $0xa0] sm:$0xff]  ;;  %v422_v61 = vld [vmem:[#allocation8 + $0xb0] sm:$0xff]  ;;  %v425_v6 = vld [vmem:[#allocation8 + $0xc8] sm:$0xff]  ;;  %v259_v33 = vrot.slane %v3727_v4, %v148_v32 }
  0x56   :  { %85 = vbcast.lane.b32.xlu0 %v83_v10, 256  ;;  %89 = vbcast.lane.b32.xlu1 %v83_v10, 264  ;;  %v427_v7 = vld [vmem:[#allocation8 + $0xd8] sm:$0xff]  ;;  %v2941_v8 = vpack.c.bf16 %v422_v61, %v420_v60  ;;  %v424_v10 = vld [vmem:[#allocation8 + $0xc0] sm:$0xff]  ;;  %v426_v12 = vld [vmem:[#allocation8 + $0xd0] sm:$0xff]  ;;  %v270_v39 = vrot.slane %v3727_v4, %v159_v35  ;;  %v160_v40 = vrot.slane %v3729_v5, %v159_v35 }
  0x57   :  { %2930 = vmatpush1.bf16.msra.mxu1 %v2929_v34  ;;  %v2943_v9 = vpack.c.bf16 %v427_v7, %v425_v6  ;;  %v429_v14 = vld [vmem:[#allocation8 + $0xe8] sm:$0xff]  ;;  %v431_v15 = vld [vmem:[#allocation8 + $0xf8] sm:$0xff]  ;;  %v2945_v16 = vpack.c.bf16 %v426_v12, %v424_v10  ;;  %v428_v18 = vld [vmem:[#allocation8 + $0xe0] sm:$0xff]  ;;  %v149_v34 = vrot.slane %v3729_v5, %v148_v32 }
  0x58   :  { %2932 = vmatprep.subr.bf16.mxu1 %v2931_v38  ;;  %3054 = vmatpush1.bf16.msra.mxu0 %v3755_v57  ;;  %v2947_v17 = vpack.c.bf16 %v431_v15, %v429_v14  ;;  %v430_v19 = vld [vmem:[#allocation8 + $0xf0] sm:$0xff]  ;;  %v666_v23 = vld [vmem:[#allocation9 + $0x48] sm:$0xff]  ;;  %v668_v24 = vld [vmem:[#allocation9 + $0x58] sm:$0xff] }
  0x59   :  { %v2949_v22 = vpack.c.bf16 %v430_v19, %v428_v18  ;;  %v3763_v25 = vpack.c.bf16 %v668_v24, %v666_v23  ;;  %v665_v27 = vld [vmem:[#allocation9 + $0x40] sm:$0xff]  ;;  %v667_v28 = vld [vmem:[#allocation9 + $0x50] sm:$0xff]  ;;  %v670_v36 = vld [vmem:[#allocation9 + $0x68] sm:$0xff] }
  0x5a   :  { %206 = vbcast.lane.b32.xlu0 %v204_v20, 256  ;;  %96 = vbcast.lane.b32.xlu1 %v94_v21, 256  ;;  %v3768_v29 = vpack.c.bf16 %v667_v28, %v665_v27  ;;  %v672_v37 = vld [vmem:[#allocation9 + $0x78] sm:$0xff]  ;;  %v74_v1 = vld [vmem:[#allocation3 + $0x8] sm:$0x3] }
  0x5b   :  { %2934 = vmatpush1.bf16.msra.mxu1 %v2933_v50  ;;  %3056 = vmatprep.subr.bf16.mxu0 %v3763_v25  ;;  %v3777_v38 = vpack.c.bf16 %v672_v37, %v670_v36  ;;  %v76_v45 = vld [vmem:[#allocation6 + $0x8] sm:$0x3]  ;;  %v182_v49 = vrot.slane %v74_v1, %v3736_v11  ;;  %v3791_v50 = vand.u32 127, %v77_v0 }
  0x5c   :  { %2936 = vmatprep.subr.bf16.mxu1 %v2935_v51  ;;  %3058 = vmatpush1.bf16.msra.mxu0 %v3768_v29  ;;  %v292_v48 = vrot.slane %v76_v45, %v3736_v11 }
  0x5d   :  { %3060 = vmatprep.subr.bf16.mxu0 %v3777_v38  ;;  %vm79_vm0 = vcmp.lt.s32.totalorder %v3791_v50, 64 }
  0x5e   :  { %210 = vbcast.lane.b32.xlu0 %v204_v20, 264  ;;  %100 = vbcast.lane.b32.xlu1 %v94_v21, 264  ;;  %v237_v20 = vrot.slane %v3727_v4, %v126_v13  ;;  %v127_v21 = vrot.slane %v3729_v5, %v126_v13  ;;  %v281_v4 = vrot.slane %v76_v45, %v3725_v3 }
  0x5f   :  { %2938 = vmatpush1.bf16.msra.mxu1 %v2937_v58  ;;  %v171_v5 = vrot.slane %v74_v1, %v3725_v3  ;;  %v3630_v58 = vmov 1.0  }
  0x60   :  { %2940 = vmatprep.subr.bf16.mxu1 %v2939_v59 }
  0x62   :  { %217 = vbcast.lane.b32.xlu0 %v215_v42, 256  ;;  %107 = vbcast.lane.b32.xlu1 %v105_v43, 256 }
  0x63   :  { %2942 = vmatpush1.bf16.msra.mxu1 %v2941_v8 }
  0x64   :  { %2944 = vmatprep.subr.bf16.mxu1 %v2943_v9 }
  0x66   :  { %221 = vbcast.lane.b32.xlu0 %v215_v42, 264  ;;  %111 = vbcast.lane.b32.xlu1 %v105_v43, 264  ;;  %v669_v42 = vld [vmem:[#allocation9 + $0x60] sm:$0xff]  ;;  %v671_v43 = vld [vmem:[#allocation9 + $0x70] sm:$0xff] }
  0x67   :  { %2946 = vmatpush1.bf16.msra.mxu1 %v2945_v16  ;;  %v3782_v44 = vpack.c.bf16 %v671_v43, %v669_v42 }
  0x68   :  { %2948 = vmatprep.subr.bf16.mxu1 %v2947_v17 }
  0x69   :  { %3062 = vmatpush1.bf16.msra.mxu0 %v3782_v44 }
  0x6a   :  { %228 = vbcast.lane.b32.xlu0 %v226_v62, 256  ;;  %118 = vbcast.lane.b32.xlu1 %v116_v63, 256 }
  0x6b   :  { %2950 = vmatpush1.bf16.msra.mxu1 %v2949_v22  ;;  %3064 = vmatprep.subr.bf16.mxu0 %v3743_v41 }
  0x6c   :  { %2952 = vmatprep.subr.bf16.mxu1 %v3743_v41 }
  0x6e   :  { %232 = vbcast.lane.b32.xlu0 %v226_v62, 264  ;;  %122 = vbcast.lane.b32.xlu1 %v116_v63, 264 }
  0x72   :  { %239 = vbcast.lane.b32.xlu0 %v237_v20, 256  ;;  %129 = vbcast.lane.b32.xlu1 %v127_v21, 256 }
  0x76   :  { %243 = vbcast.lane.b32.xlu0 %v237_v20, 264  ;;  %133 = vbcast.lane.b32.xlu1 %v127_v21, 264 }
  0x7a   :  { %250 = vbcast.lane.b32.xlu0 %v248_v30, 256  ;;  %140 = vbcast.lane.b32.xlu1 %v138_v31, 256 }
  0x7e   :  { %254 = vbcast.lane.b32.xlu0 %v248_v30, 264  ;;  %144 = vbcast.lane.b32.xlu1 %v138_v31, 264 }
  0x82   :  { %261 = vbcast.lane.b32.xlu0 %v259_v33, 256  ;;  %151 = vbcast.lane.b32.xlu1 %v149_v34, 256 }
  0x86   :  { %265 = vbcast.lane.b32.xlu0 %v259_v33, 264  ;;  %155 = vbcast.lane.b32.xlu1 %v149_v34, 264 }
  0x8a   :  { %272 = vbcast.lane.b32.xlu0 %v270_v39, 256  ;;  %162 = vbcast.lane.b32.xlu1 %v160_v40, 256 }
  0x8e   :  { %276 = vbcast.lane.b32.xlu0 %v270_v39, 264  ;;  %166 = vbcast.lane.b32.xlu1 %v160_v40, 264 }
  0x92   :  { %283 = vbcast.lane.b32.xlu0 %v281_v4, 256  ;;  %173 = vbcast.lane.b32.xlu1 %v171_v5, 256 }
  0x96   :  { %287 = vbcast.lane.b32.xlu0 %v281_v4, 264  ;;  %177 = vbcast.lane.b32.xlu1 %v171_v5, 264 }
  0x9a   :  { %294 = vbcast.lane.b32.xlu0 %v292_v48, 256  ;;  %184 = vbcast.lane.b32.xlu1 %v182_v49, 256 }
  0x9e   :  { %298 = vbcast.lane.b32.xlu0 %v292_v48, 264  ;;  %188 = vbcast.lane.b32.xlu1 %v182_v49, 264 }
  0xc4   :  { %v196_v51 = vpop.permute.xlu0 %195  ;;  %v200_v52 = vpop.permute.xlu1 %199 }
  0xc5   :  { %v300_v3 = vadd.s32 64, %v196_v51  ;;  %v301_v53 = vadd.s32 64, %v200_v52 }
  0xc8   :  { %v86_v54 = vpop.permute.xlu0 %85  ;;  %v90_v55 = vpop.permute.xlu1 %89 }
  0xc9   :  { %v320_v56 = vsel %vm79_vm0, %v86_v54, %v300_v3  ;;  %v321_v11 = vsel %vm79_vm0, %v90_v55, %v301_v53 }
  0xca   :  { %vm340_vm1 = vcmp.eq.s32.totalorder %v3791_v50, %v320_v56  ;;  %vm341_vm2 = vcmp.eq.s32.totalorder %v3791_v50, %v321_v11 }
  0xcb   :  { %2801 = vmatmul.mubr.msk.f32.vlgmr.msra.gmra.mrb[0].mxu1 %vm340_vm1, %v3630_v58 }
  0xcc   :  { %2954 = vmatpush1.bf16.msra.mxu1 %v3747_v46  ;;  %502 = vmatprep.mubr.f32.mxu1 %v3629_v2  ;;  %v207_v0 = vpop.permute.xlu0 %206  ;;  %v97_v59 = vpop.permute.xlu1 %96 }
  0xcd   :  { %v302_v60 = vadd.s32 64, %v207_v0  ;;  %2956 = vmatprep.subr.bf16.mxu1 %v3749_v47 }
  0xcf   :  { %2802 = vmatmul.mubr.msk.f32.gmra.mrb[2].mxu1 %vm341_vm2, %v3630_v58  ;;  %v322_v61 = vsel %vm79_vm0, %v97_v59, %v302_v60 }
  0xd0   :  { %vm342_vm3 = vcmp.eq.s32.totalorder %v3791_v50, %v322_v61  ;;  %508 = vmatprep.mubr.f32.mxu1 %v3629_v2  ;;  %v211_v62 = vpop.permute.xlu0 %210  ;;  %v101_v63 = vpop.permute.xlu1 %100  ;;  %2958 = vmatpush1.bf16.msra.mxu1 %v3755_v57 }
  0xd1   :  { %v303_v6 = vadd.s32 64, %v211_v62  ;;  %2960 = vmatprep.subr.bf16.mxu1 %v3763_v25 }
  0xd3   :  { %2803 = vmatmul.mubr.msk.f32.gmra.mrb[4].mxu1 %vm342_vm3, %v3630_v58  ;;  %v323_v7 = vsel %vm79_vm0, %v101_v63, %v303_v6 }
  0xd4   :  { %vm343_vm4 = vcmp.eq.s32.totalorder %v3791_v50, %v323_v7  ;;  %514 = vmatprep.mubr.f32.mxu1 %v3629_v2  ;;  %v218_v8 = vpop.permute.xlu0 %217  ;;  %v108_v9 = vpop.permute.xlu1 %107  ;;  %2962 = vmatpush1.bf16.msra.mxu1 %v3768_v29 }
  0xd5   :  { %v304_v10 = vadd.s32 64, %v218_v8  ;;  %2964 = vmatprep.subr.bf16.mxu1 %v3777_v38 }
  0xd7   :  { %2804 = vmatmul.mubr.msk.f32.gmra.mrb[6].mxu1 %vm343_vm4, %v3630_v58  ;;  %v324_v12 = vsel %vm79_vm0, %v108_v9, %v304_v10 }
  0xd8   :  { %vm344_vm5 = vcmp.eq.s32.totalorder %v3791_v50, %v324_v12  ;;  %520 = vmatprep.mubr.f32.mxu1 %v3629_v2  ;;  %v222_v13 = vpop.permute.xlu0 %221  ;;  %v112_v14 = vpop.permute.xlu1 %111  ;;  %2966 = vmatpush1.bf16.msra.mxu1 %v3782_v44 }
  0xd9   :  { %v305_v15 = vadd.s32 64, %v222_v13  ;;  %2968 = vmatprep.subr.bf16.mxu1 %v3743_v41 }
  0xdb   :  { %2805 = vmatmul.mubr.msk.f32.gmra.mrb[8].mxu1 %vm344_vm5, %v3630_v58  ;;  %v325_v16 = vsel %vm79_vm0, %v112_v14, %v305_v15 }
  0xdc   :  { %vm345_vm6 = vcmp.eq.s32.totalorder %v3791_v50, %v325_v16  ;;  %526 = vmatprep.mubr.f32.mxu1 %v3629_v2  ;;  %v229_v17 = vpop.permute.xlu0 %228  ;;  %v119_v18 = vpop.permute.xlu1 %118 }
  0xdd   :  { %v306_v19 = vadd.s32 64, %v229_v17 }
  0xdf   :  { %2806 = vmatmul.mubr.msk.f32.gmra.mrb[10].mxu1 %vm345_vm6, %v3630_v58  ;;  %v326_v20 = vsel %vm79_vm0, %v119_v18, %v306_v19  ;;  %vm684_vm6 = vcmask 523264  }
  0xe0   :  { %vm346_vm7 = vcmp.eq.s32.totalorder %v3791_v50, %v326_v20  ;;  %532 = vmatprep.mubr.f32.mxu1 %v3629_v2  ;;  %v233_v21 = vpop.permute.xlu0 %232  ;;  %v123_v22 = vpop.permute.xlu1 %122 }
  0xe1   :  { %v307_v23 = vadd.s32 64, %v233_v21 }
  0xe3   :  { %2807 = vmatmul.mubr.msk.f32.gmra.mrb[12].mxu1 %vm346_vm7, %v3630_v58  ;;  %v327_v24 = vsel %vm79_vm0, %v123_v22, %v307_v23 }
  0xe4   :  { %vm347_vm8 = vcmp.eq.s32.totalorder %v3791_v50, %v327_v24  ;;  %538 = vmatprep.mubr.f32.mxu1 %v3629_v2  ;;  %v240_v26 = vpop.permute.xlu0 %239  ;;  %v130_v27 = vpop.permute.xlu1 %129 }
  0xe5   :  { %v308_v28 = vadd.s32 64, %v240_v26 }
  0xe7   :  { %2808 = vmatmul.mubr.msk.f32.gmra.mrb[14].mxu1 %vm347_vm8, %v3630_v58  ;;  %v328_v30 = vsel %vm79_vm0, %v130_v27, %v308_v28 }
  0xe8   :  { %vm348_vm9 = vcmp.eq.s32.totalorder %v3791_v50, %v328_v30  ;;  %544 = vmatprep.mubr.f32.mxu1 %v3629_v2  ;;  %v244_v31 = vpop.permute.xlu0 %243  ;;  %v134_v32 = vpop.permute.xlu1 %133 }
  0xe9   :  { %v309_v33 = vadd.s32 64, %v244_v31 }
  0xeb   :  { %2809 = vmatmul.mubr.msk.f32.gmra.mrb[16].mxu1 %vm348_vm9, %v3630_v58  ;;  %v329_v34 = vsel %vm79_vm0, %v134_v32, %v309_v33 }
  0xec   :  { %vm349_vm10 = vcmp.eq.s32.totalorder %v3791_v50, %v329_v34  ;;  %550 = vmatprep.mubr.f32.mxu1 %v3629_v2  ;;  %v251_v35 = vpop.permute.xlu0 %250  ;;  %v141_v36 = vpop.permute.xlu1 %140 }
  0xed   :  { %v310_v37 = vadd.s32 64, %v251_v35 }
  0xef   :  { %2810 = vmatmul.mubr.msk.f32.gmra.mrb[18].mxu1 %vm349_vm10, %v3630_v58  ;;  %v330_v39 = vsel %vm79_vm0, %v141_v36, %v310_v37 }
  0xf0   :  { %vm350_vm11 = vcmp.eq.s32.totalorder %v3791_v50, %v330_v39  ;;  %556 = vmatprep.mubr.f32.mxu1 %v3629_v2  ;;  %v255_v40 = vpop.permute.xlu0 %254  ;;  %v145_v42 = vpop.permute.xlu1 %144 }
  0xf1   :  { %v311_v43 = vadd.s32 64, %v255_v40 }
  0xf3   :  { %2811 = vmatmul.mubr.msk.f32.gmra.mrb[20].mxu1 %vm350_vm11, %v3630_v58  ;;  %v331_v45 = vsel %vm79_vm0, %v145_v42, %v311_v43 }
  0xf4   :  { %vm351_vm12 = vcmp.eq.s32.totalorder %v3791_v50, %v331_v45  ;;  %562 = vmatprep.mubr.f32.mxu1 %v3629_v2  ;;  %v262_v1 = vpop.permute.xlu0 %261  ;;  %v152_v4 = vpop.permute.xlu1 %151 }
  0xf5   :  { %v312_v5 = vadd.s32 64, %v262_v1 }
  0xf7   :  { %2812 = vmatmul.mubr.msk.f32.gmra.mrb[22].mxu1 %vm351_vm12, %v3630_v58  ;;  %v332_v48 = vsel %vm79_vm0, %v152_v4, %v312_v5 }
  0xf8   :  { %vm352_vm13 = vcmp.eq.s32.totalorder %v3791_v50, %v332_v48  ;;  %568 = vmatprep.mubr.f32.mxu1 %v3629_v2  ;;  %v266_v49 = vpop.permute.xlu0 %265  ;;  %v156_v51 = vpop.permute.xlu1 %155 }
  0xf9   :  { %v313_v52 = vadd.s32 64, %v266_v49 }
  0xfb   :  { %2813 = vmatmul.mubr.msk.f32.gmra.mrb[24].mxu1 %vm352_vm13, %v3630_v58  ;;  %v333_v3 = vsel %vm79_vm0, %v156_v51, %v313_v52 }
  0xfc   :  { %vm353_vm14 = vcmp.eq.s32.totalorder %v3791_v50, %v333_v3  ;;  %574 = vmatprep.mubr.f32.mxu1 %v3629_v2  ;;  %v273_v53 = vpop.permute.xlu0 %272  ;;  %v163_v54 = vpop.permute.xlu1 %162 }
  0xfd   :  { %v314_v55 = vadd.s32 64, %v273_v53 }
  0xff   :  { %2814 = vmatmul.mubr.msk.f32.gmra.mrb[26].mxu1 %vm353_vm14, %v3630_v58  ;;  %v334_v56 = vsel %vm79_vm0, %v163_v54, %v314_v55 }
 0x100   :  { %vm354_vm15 = vcmp.eq.s32.totalorder %v3791_v50, %v334_v56  ;;  %580 = vmatprep.mubr.f32.mxu1 %v3629_v2  ;;  %v277_v11 = vpop.permute.xlu0 %276  ;;  %v167_v0 = vpop.permute.xlu1 %166 }
 0x101   :  { %v315_v59 = vadd.s32 64, %v277_v11 }
 0x103   :  { %2815 = vmatmul.mubr.msk.f32.gmra.mrb[28].mxu1 %vm354_vm15, %v3630_v58  ;;  %v335_v60 = vsel %vm79_vm0, %v167_v0, %v315_v59 }
 0x104   :  { %vm355_vm1 = vcmp.eq.s32.totalorder %v3791_v50, %v335_v60  ;;  %586 = vmatprep.mubr.f32.mxu1 %v3629_v2  ;;  %v284_v61 = vpop.permute.xlu0 %283  ;;  %v174_v62 = vpop.permute.xlu1 %173 }
 0x105   :  { %v316_v63 = vadd.s32 64, %v284_v61 }
 0x107   :  { %2816 = vmatmul.mubr.msk.f32.gmra.mrb[30].mxu1 %vm355_vm1, %v3630_v58  ;;  %v336_v6 = vsel %vm79_vm0, %v174_v62, %v316_v63 }
 0x108   :  { %vm356_vm2 = vcmp.eq.s32.totalorder %v3791_v50, %v336_v6  ;;  %592 = vmatprep.mubr.f32.mxu1 %v3629_v2  ;;  %v288_v7 = vpop.permute.xlu0 %287  ;;  %v178_v8 = vpop.permute.xlu1 %177 }
 0x109   :  { %v317_v9 = vadd.s32 64, %v288_v7 }
 0x10b   :  { %2817 = vmatmul.mubr.msk.f32.gmra.mrb[32].mxu1 %vm356_vm2, %v3630_v58  ;;  %v337_v10 = vsel %vm79_vm0, %v178_v8, %v317_v9 }
 0x10c   :  { %vm357_vm3 = vcmp.eq.s32.totalorder %v3791_v50, %v337_v10  ;;  %598 = vmatprep.mubr.f32.mxu1 %v3629_v2  ;;  %v295_v12 = vpop.permute.xlu0 %294  ;;  %v185_v13 = vpop.permute.xlu1 %184 }
 0x10d   :  { %v318_v14 = vadd.s32 64, %v295_v12 }
 0x10f   :  { %2818 = vmatmul.mubr.msk.f32.gmra.mrb[34].mxu1 %vm357_vm3, %v3630_v58  ;;  %v338_v15 = vsel %vm79_vm0, %v185_v13, %v318_v14  ;;  %v3965_v14 = vadd.s32 128, %v3791_v50 }
 0x110   :  { %vm358_vm4 = vcmp.eq.s32.totalorder %v3791_v50, %v338_v15  ;;  %604 = vmatprep.mubr.f32.mxu1 %v3629_v2  ;;  %v299_v16 = vpop.permute.xlu0 %298  ;;  %v189_v17 = vpop.permute.xlu1 %188 }
 0x111   :  { %v319_v18 = vadd.s32 64, %v299_v16 }
 0x113   :  { %2819 = vmatmul.mubr.msk.f32.gmra.mrb[36].mxu1 %vm358_vm4, %v3630_v58  ;;  %v339_v19 = vsel %vm79_vm0, %v189_v17, %v319_v18  ;;  %vm677_vm0 = vcmp.lt.s32.totalorder %v3965_v14, 192 }
 0x114   :  { %vm359_vm5 = vcmp.eq.s32.totalorder %v3791_v50, %v339_v19  ;;  %610 = vmatprep.mubr.f32.mxu1 %v3629_v2 }
 0x117   :  { %2820 = vmatmul.mubr.msk.f32.gmra.mrb[38].mxu1 %vm359_vm5, %v3630_v58 }
 0x118   :  { %752 = vmatprep.mubr.f32.mxu1 %v3629_v2 }
 0x11b   :  { %753 = vmatmul.mubr.f32.vlgmr.msra.gmra.mrb[40].mxu1 %v3629_v2 }
 0x11c   :  { %2970 = vmatpush1.bf16.msra.mxu1 %v3747_v46  ;;  %891 = vmatprep.mubr.f32.mxu1 %v3629_v2 }
 0x11d   :  { %2972 = vmatprep.subr.bf16.mxu1 %v3749_v47 }
 0x120   :  { %2974 = vmatpush1.bf16.msra.mxu1 %v3755_v57 }
 0x121   :  { %2976 = vmatprep.subr.bf16.mxu1 %v3763_v25 }
 0x124   :  { %2978 = vmatpush1.bf16.msra.mxu1 %v3768_v29 }
 0x125   :  { %2980 = vmatprep.subr.bf16.mxu1 %v3777_v38 }
 0x128   :  { %2982 = vmatpush1.bf16.msra.mxu1 %v3782_v44 }
 0x129   :  { %2984 = vmatprep.subr.bf16.mxu1 %v3743_v41 }
 0x19e   :  { %v498_v58 = vpop.f32.mrb[0].mxu1 }
 0x19f   :  { %v500_v20 = vpop.f32.mrb[1].mxu1 }
 0x1a2   :  { %v504_v21 = vpop.f32.mrb[2].mxu1 }
 0x1a3   :  { %v506_v22 = vpop.f32.mrb[3].mxu1 }
 0x1ba   :  { %v3912_v23 = vpop.f32.mrb[14].mxu1 }
 0x1bb   :  { %v3914_v24 = vpop.f32.mrb[15].mxu1 }
 0x1be   :  { %v3916_v26 = vpop.f32.mrb[16].mxu1 }
 0x1bf   :  { %v3918_v27 = vpop.f32.mrb[17].mxu1 }
 0x1c2   :  { %v3920_v28 = vpop.f32.mrb[18].mxu1 }
 0x1c3   :  { %v3922_v30 = vpop.f32.mrb[19].mxu1 }
 0x1c6   :  { %v3924_v31 = vpop.f32.mrb[20].mxu1 }
 0x1c7   :  { %v3926_v32 = vpop.f32.mrb[21].mxu1 }
 0x1ca   :  { %v3928_v33 = vpop.f32.mrb[22].mxu1 }
 0x1cb   :  { %v3930_v34 = vpop.f32.mrb[23].mxu1 }
 0x1ce   :  { %v3932_v35 = vpop.f32.mrb[24].mxu1 }
 0x1cf   :  { %v3934_v36 = vpop.f32.mrb[25].mxu1 }
 0x1d2   :  { %v3936_v37 = vpop.f32.mrb[26].mxu1 }
 0x1d3   :  { %v3938_v39 = vpop.f32.mrb[27].mxu1 }
 0x1d6   :  { %v3940_v40 = vpop.f32.mrb[28].mxu1 }
 0x1d7   :  { %v3942_v42 = vpop.f32.mrb[29].mxu1 }
 0x1da   :  { %v3944_v43 = vpop.f32.mrb[30].mxu1 }
 0x1db   :  { %v3946_v45 = vpop.f32.mrb[31].mxu1 }
 0x1de   :  { %v3948_v1 = vpop.f32.mrb[32].mxu1 }
 0x1df   :  { %v3950_v4 = vpop.f32.mrb[33].mxu1 }
 0x1e2   :  { %v3952_v5 = vpop.f32.mrb[34].mxu1 }
 0x1e3   :  { %v3954_v48 = vpop.f32.mrb[35].mxu1 }
 0x1e6   :  { %v3956_v49 = vpop.f32.mrb[36].mxu1 }
 0x1e7   :  { %v3958_v51 = vpop.f32.mrb[37].mxu1 }
 0x1ea   :  { %v3960_v52 = vpop.f32.mrb[38].mxu1 }
 0x1eb   :  { %v3962_v3 = vpop.f32.mrb[39].mxu1 }
 0x1ee   :  { %v754_v53 = vpop.f32.mrb[40].mxu1 }
 0x1ef   :  { %v759_v54 = vadd.f32 %v754_v53, %v498_v58  ;;  %v788_v55 = vadd.f32 %v754_v53, %v504_v21  ;;  %v756_v56 = vpop.f32.mrb[41].mxu1 }
 0x1f0   :  { %v760_v11 = vadd.f32 %v756_v56, %v500_v20  ;;  %v789_v0 = vadd.f32 %v756_v56, %v506_v22 }
 0x1f1   :  { %v2821_v59 = vmul.f32 -1.442695, %v759_v54  ;;  %v2825_v62 = vmul.f32 -1.442695, %v788_v55 }
 0x1f2   :  { %v2822_v60 = vmul.f32 -1.442695, %v760_v11  ;;  %v2826_v61 = vmul.f32 -1.442695, %v789_v0 }
 0x1f3   :  { %3303 = vpow2.f32 %v2821_v59 }
 0x1f4   :  { %3305 = vpow2.f32 %v2822_v60 }
 0x1f5   :  { %3307 = vpow2.f32 %v2826_v61 }
 0x1f6   :  { %3309 = vpow2.f32 %v2825_v62 }
 0x1fd   :  { %v3304_v63 = vpop.eup %3303 }
 0x1fe   :  { %v3306_v6 = vpop.eup %3305  ;;  %v767_v12 = vadd.f32 1.0, %v3304_v63 }
 0x1ff   :  { %v3308_v7 = vpop.eup %3307  ;;  %v768_v8 = vadd.f32 1.0, %v3306_v6 }
 0x200   :  { %v3310_v9 = vpop.eup %3309  ;;  %v797_v10 = vadd.f32 1.0, %v3308_v7 }
 0x201   :  { %3311 = vrcp.f32 %v768_v8  ;;  %v796_v13 = vadd.f32 1.0, %v3310_v9 }
 0x202   :  { %3313 = vrcp.f32 %v797_v10 }
 0x203   :  { %3315 = vrcp.f32 %v767_v12 }
 0x204   :  { %3317 = vrcp.f32 %v796_v13 }
 0x20b   :  { %v3312_v15 = vpop.eup %3311 }
 0x20c   :  { %v3314_v16 = vpop.eup %3313  ;;  %v774_v17 = vmul.f32 2.0, %v3312_v15 }
 0x20d   :  { %v803_v18 = vmul.f32 2.0, %v3314_v16  ;;  %v3316_v20 = vpop.eup %3315 }
 0x20e   :  { %v2824_v19 = vadd.f32 -1.0, %v774_v17  ;;  %v3318_v22 = vpop.eup %3317  ;;  %v779_v50 = vmul.f32 0.0, %v3316_v20 }
 0x20f   :  { %v2828_v58 = vadd.f32 -1.0, %v803_v18  ;;  %v808_v56 = vmul.f32 0.0, %v3318_v22 }
 0x210   :  { %v778_v21 = vsel %vm677_vm0, %v2824_v19, %v3312_v15 }
 0x211   :  { %v807_v53 = vsel %vm677_vm0, %v2828_v58, %v3314_v16  ;;  %v780_v54 = vmul.f32 %v3316_v20, %v778_v21 }
 0x212   :  { %v809_v55 = vmul.f32 %v3318_v22, %v807_v53 }
 0x213   :  { %782 = vrot.lane.b32.xlu0 %v780_v54, %s3631_s3 }
 0x214   :  { %811 = vrot.lane.b32.xlu1 %v809_v55, %s3631_s3 }
 0x285   :  { %v783_v11 = vpop.permute.xlu0 %782 }
 0x286   :  { %v812_v0 = vpop.permute.xlu1 %811  ;;  %v3974_v59 = vadd.f32 %v783_v11, %v779_v50 }
 0x287   :  { %v3976_v60 = vadd.f32 %v812_v0, %v808_v56 }
 0x288   :  { %3319 = vtanh.f32 %v3974_v59 }
 0x289   :  { %3321 = vtanh.f32 %v3976_v60 }
 0x292   :  { %v3320_v61 = vpop.eup %3319 }
 0x293   :  { %v3322_v62 = vpop.eup %3321  ;;  %v787_v63 = vmul.f32 %v3320_v61, %v778_v21 }
 0x294   :  { %v816_v6 = vmul.f32 %v3322_v62, %v807_v53 }
 0x295   :  { %823 = vrot.lane.b32.xlu0 %v787_v63, %s3631_s3 }
 0x296   :  { %928 = vrot.lane.b32.xlu1 %v816_v6, %s3631_s3 }
 0x307   :  { %v824_v7 = vpop.permute.xlu0 %823 }
 0x308   :  { %2829 = vmatmul.mubr.msk.f32.vlgmr.msra.gmra.mrb[4].mxu1 %vm684_vm6, %v824_v7  ;;  %v929_v8 = vpop.permute.xlu1 %928 }
 0x309   :  { %2986 = vmatpush1.bf16.msra.mxu1 %v3747_v46  ;;  %996 = vmatprep.mubr.f32.mxu1 %v3629_v2 }
 0x30a   :  { %2988 = vmatprep.subr.bf16.mxu1 %v3749_v47 }
 0x30d   :  { %2990 = vmatpush1.bf16.msra.mxu1 %v3755_v57 }
 0x30e   :  { %2992 = vmatprep.subr.bf16.mxu1 %v3763_v25 }
 0x311   :  { %2994 = vmatpush1.bf16.msra.mxu1 %v3768_v29 }
 0x312   :  { %2996 = vmatprep.subr.bf16.mxu1 %v3777_v38 }
 0x315   :  { %2998 = vmatpush1.bf16.msra.mxu1 %v3782_v44 }
 0x316   :  { %3000 = vmatprep.subr.bf16.mxu1 %v3743_v41 }
 0x318   :  { %2834 = vmatmul.mubr.msk.f32.vlgmr.msra.gmra.mrb[6].mxu1 %vm684_vm6, %v929_v8 }
 0x319   :  { %3002 = vmatpush1.bf16.msra.mxu1 %v3747_v46  ;;  %1106 = vmatprep.mubr.f32.mxu1 %v3629_v2 }
 0x31a   :  { %3004 = vmatprep.subr.bf16.mxu1 %v3749_v47 }
 0x31d   :  { %3006 = vmatpush1.bf16.msra.mxu1 %v3755_v57 }
 0x31e   :  { %3008 = vmatprep.subr.bf16.mxu1 %v3763_v25 }
 0x321   :  { %3010 = vmatpush1.bf16.msra.mxu1 %v3768_v29 }
 0x322   :  { %3012 = vmatprep.subr.bf16.mxu1 %v3777_v38 }
 0x325   :  { %3014 = vmatpush1.bf16.msra.mxu1 %v3782_v44 }
 0x326   :  { %3016 = vmatprep.subr.bf16.mxu1 %v3743_v41 }
 0x3db   :  { %v893_v9 = vpop.f32.mrb[4].mxu1 }
 0x3dc   :  { %v2830_v10 = vmul.f32 -1.442695, %v893_v9  ;;  %v895_v12 = vpop.f32.mrb[5].mxu1 }
 0x3dd   :  { %v2831_v13 = vmul.f32 -1.442695, %v895_v12 }
 0x3df   :  { %3323 = vpow2.f32 %v2831_v13 }
 0x3e0   :  { %3325 = vpow2.f32 %v2830_v10 }
 0x3e9   :  { %v3324_v15 = vpop.eup %3323 }
 0x3ea   :  { %v3326_v16 = vpop.eup %3325  ;;  %v907_v17 = vadd.f32 1.0, %v3324_v15 }
 0x3eb   :  { %v998_v18 = vpop.f32.mrb[6].mxu1  ;;  %v906_v20 = vadd.f32 1.0, %v3326_v16 }
 0x3ec   :  { %3327 = vrcp.f32 %v907_v17  ;;  %v2835_v19 = vmul.f32 -1.442695, %v998_v18  ;;  %v1000_v58 = vpop.f32.mrb[7].mxu1 }
 0x3ed   :  { %v2836_v21 = vmul.f32 -1.442695, %v1000_v58 }
 0x3ef   :  { %3329 = vpow2.f32 %v2836_v21 }
 0x3f0   :  { %3331 = vpow2.f32 %v2835_v19 }
 0x3f1   :  { %3333 = vrcp.f32 %v906_v20 }
 0x3f6   :  { %v3328_v22 = vpop.eup %3327 }
 0x3f7   :  { %v913_v53 = vmul.f32 2.0, %v3328_v22 }
 0x3f9   :  { %v3330_v54 = vpop.eup %3329  ;;  %v2833_v55 = vadd.f32 -1.0, %v913_v53 }
 0x3fa   :  { %v3332_v50 = vpop.eup %3331  ;;  %v1012_v56 = vadd.f32 1.0, %v3330_v54 }
 0x3fb   :  { %v3334_v11 = vpop.eup %3333  ;;  %v917_v0 = vsel %vm677_vm0, %v2833_v55, %v3328_v22  ;;  %v1011_v62 = vadd.f32 1.0, %v3332_v50 }
 0x3fc   :  { %3335 = vrcp.f32 %v1012_v56  ;;  %v919_v61 = vmul.f32 %v3334_v11, %v917_v0  ;;  %v918_v12 = vmul.f32 %v3334_v11, %v3974_v59 }
 0x3fd   :  { %3337 = vrcp.f32 %v1011_v62 }
 0x3fe   :  { %921 = vrot.lane.b32.xlu0 %v919_v61, %s3631_s3 }
 0x406   :  { %v3336_v63 = vpop.eup %3335 }
 0x407   :  { %v1018_v6 = vmul.f32 2.0, %v3336_v63  ;;  %v3338_v8 = vpop.eup %3337 }
 0x408   :  { %v1023_v18 = vmul.f32 %v3338_v8, %v3976_v60 }
 0x409   :  { %v2838_v7 = vadd.f32 -1.0, %v1018_v6 }
 0x40b   :  { %v1022_v9 = vsel %vm677_vm0, %v2838_v7, %v3336_v63 }
 0x40c   :  { %v1024_v10 = vmul.f32 %v3338_v8, %v1022_v9 }
 0x40e   :  { %1026 = vrot.lane.b32.xlu1 %v1024_v10, %s3631_s3 }
 0x470   :  { %v922_v13 = vpop.permute.xlu0 %921 }
 0x471   :  { %v4009_v15 = vadd.f32 %v922_v13, %v918_v12 }
 0x473   :  { %3339 = vtanh.f32 %v4009_v15 }
 0x47d   :  { %v3340_v16 = vpop.eup %3339 }
 0x47e   :  { %v926_v17 = vmul.f32 %v3340_v16, %v917_v0 }
 0x480   :  { %v1027_v19 = vpop.permute.xlu1 %1026  ;;  %1038 = vrot.lane.b32.xlu0 %v926_v17, %s3631_s3 }
 0x481   :  { %v4014_v58 = vadd.f32 %v1027_v19, %v1023_v18 }
 0x483   :  { %3341 = vtanh.f32 %v4014_v58 }
 0x48d   :  { %v3342_v20 = vpop.eup %3341 }
 0x48e   :  { %v1031_v21 = vmul.f32 %v3342_v20, %v1022_v9 }
 0x490   :  { %1143 = vrot.lane.b32.xlu1 %v1031_v21, %s3631_s3 }
 0x4f2   :  { %v1039_v59 = vpop.permute.xlu0 %1038 }
 0x4f3   :  { %2839 = vmatmul.mubr.msk.f32.vlgmr.msra.gmra.mrb[8].mxu1 %vm684_vm6, %v1039_v59 }
 0x4f4   :  { %3018 = vmatpush1.bf16.msra.mxu1 %v3747_v46  ;;  %1211 = vmatprep.mubr.f32.mxu1 %v3629_v2 }
 0x4f5   :  { %3020 = vmatprep.subr.bf16.mxu1 %v3749_v47 }
 0x4f8   :  { %3022 = vmatpush1.bf16.msra.mxu1 %v3755_v57 }
 0x4f9   :  { %3024 = vmatprep.subr.bf16.mxu1 %v3763_v25 }
 0x4fc   :  { %3026 = vmatpush1.bf16.msra.mxu1 %v3768_v29 }
 0x4fd   :  { %3028 = vmatprep.subr.bf16.mxu1 %v3777_v38 }
 0x500   :  { %3030 = vmatpush1.bf16.msra.mxu1 %v3782_v44 }
 0x501   :  { %3032 = vmatprep.subr.bf16.mxu1 %v3743_v41 }
 0x502   :  { %v1144_v60 = vpop.permute.xlu1 %1143 }
 0x503   :  { %2844 = vmatmul.mubr.msk.f32.vlgmr.msra.gmra.mrb[10].mxu1 %vm684_vm6, %v1144_v60 }
 0x504   :  { %3034 = vmatpush1.bf16.msra.mxu1 %v3747_v46  ;;  %1321 = vmatprep.mubr.f32.mxu1 %v3629_v2 }
 0x505   :  { %3036 = vmatprep.subr.bf16.mxu1 %v3749_v47 }
 0x508   :  { %3038 = vmatpush1.bf16.msra.mxu1 %v3755_v57 }
 0x509   :  { %3040 = vmatprep.subr.bf16.mxu1 %v3763_v25 }
 0x50c   :  { %3042 = vmatpush1.bf16.msra.mxu1 %v3768_v29 }
 0x50d   :  { %3044 = vmatprep.subr.bf16.mxu1 %v3777_v38 }
 0x510   :  { %3046 = vmatpush1.bf16.msra.mxu1 %v3782_v44 }
 0x5c6   :  { %v1108_v22 = vpop.f32.mrb[8].mxu1 }
 0x5c7   :  { %v2840_v53 = vmul.f32 -1.442695, %v1108_v22  ;;  %v1110_v54 = vpop.f32.mrb[9].mxu1 }
 0x5c8   :  { %v2841_v55 = vmul.f32 -1.442695, %v1110_v54 }
 0x5ca   :  { %3343 = vpow2.f32 %v2841_v55 }
 0x5cb   :  { %3345 = vpow2.f32 %v2840_v53 }
 0x5d4   :  { %v3344_v50 = vpop.eup %3343 }
 0x5d5   :  { %v3346_v56 = vpop.eup %3345  ;;  %v1122_v11 = vadd.f32 1.0, %v3344_v50 }
 0x5d6   :  { %v1213_v0 = vpop.f32.mrb[10].mxu1  ;;  %v1121_v63 = vadd.f32 1.0, %v3346_v56 }
 0x5d7   :  { %3347 = vrcp.f32 %v1122_v11  ;;  %v2845_v61 = vmul.f32 -1.442695, %v1213_v0  ;;  %v1215_v62 = vpop.f32.mrb[11].mxu1 }
 0x5d8   :  { %v2846_v6 = vmul.f32 -1.442695, %v1215_v62 }
 0x5da   :  { %3349 = vpow2.f32 %v2846_v6 }
 0x5db   :  { %3351 = vpow2.f32 %v2845_v61 }
 0x5dc   :  { %3353 = vrcp.f32 %v1121_v63 }
 0x5e1   :  { %v3348_v7 = vpop.eup %3347 }
 0x5e2   :  { %v1128_v8 = vmul.f32 2.0, %v3348_v7 }
 0x5e4   :  { %v3350_v9 = vpop.eup %3349  ;;  %v2843_v10 = vadd.f32 -1.0, %v1128_v8 }
 0x5e5   :  { %v3352_v12 = vpop.eup %3351  ;;  %v1227_v13 = vadd.f32 1.0, %v3350_v9 }
 0x5e6   :  { %v3354_v16 = vpop.eup %3353  ;;  %v1132_v17 = vsel %vm677_vm0, %v2843_v10, %v3348_v7  ;;  %v1226_v19 = vadd.f32 1.0, %v3352_v12 }
 0x5e7   :  { %3355 = vrcp.f32 %v1227_v13  ;;  %v1134_v18 = vmul.f32 %v3354_v16, %v1132_v17  ;;  %v1133_v54 = vmul.f32 %v3354_v16, %v4009_v15 }
 0x5e8   :  { %3357 = vrcp.f32 %v1226_v19 }
 0x5e9   :  { %1136 = vrot.lane.b32.xlu0 %v1134_v18, %s3631_s3 }
 0x5f1   :  { %v3356_v20 = vpop.eup %3355 }
 0x5f2   :  { %v1233_v21 = vmul.f32 2.0, %v3356_v20  ;;  %v3358_v60 = vpop.eup %3357 }
 0x5f3   :  { %v1238_v0 = vmul.f32 %v3358_v60, %v4014_v58 }
 0x5f4   :  { %v2848_v59 = vadd.f32 -1.0, %v1233_v21 }
 0x5f6   :  { %v1237_v22 = vsel %vm677_vm0, %v2848_v59, %v3356_v20 }
 0x5f7   :  { %v1239_v53 = vmul.f32 %v3358_v60, %v1237_v22 }
 0x5f9   :  { %1241 = vrot.lane.b32.xlu1 %v1239_v53, %s3631_s3 }
 0x65b   :  { %v1137_v55 = vpop.permute.xlu0 %1136 }
 0x65c   :  { %v4044_v50 = vadd.f32 %v1137_v55, %v1133_v54 }
 0x65e   :  { %3359 = vtanh.f32 %v4044_v50 }
 0x668   :  { %v3360_v56 = vpop.eup %3359 }
 0x669   :  { %v1141_v11 = vmul.f32 %v3360_v56, %v1132_v17 }
 0x66b   :  { %v1242_v61 = vpop.permute.xlu1 %1241  ;;  %1253 = vrot.lane.b32.xlu0 %v1141_v11, %s3631_s3 }
 0x66c   :  { %v4049_v62 = vadd.f32 %v1242_v61, %v1238_v0 }
 0x66e   :  { %3361 = vtanh.f32 %v4049_v62 }
 0x678   :  { %v3362_v63 = vpop.eup %3361 }
 0x679   :  { %v1246_v6 = vmul.f32 %v3362_v63, %v1237_v22 }
 0x67b   :  { %1358 = vrot.lane.b32.xlu1 %v1246_v6, %s3631_s3 }
 0x6dd   :  { %v1254_v15 = vpop.permute.xlu0 %1253 }
 0x6de   :  { %2849 = vmatmul.mubr.msk.f32.vlgmr.msra.gmra.mrb[12].mxu1 %vm684_vm6, %v1254_v15 }
 0x6ed   :  { %v1359_v7 = vpop.permute.xlu1 %1358 }
 0x6ee   :  { %2854 = vmatmul.mubr.msk.f32.vlgmr.msra.gmra.mrb[0].mxu0 %vm684_vm6, %v1359_v7 }
 0x6ef   :  { %3066 = vmatpush1.bf16.msra.mxu0 %v3747_v46  ;;  %1536 = vmatprep.mubr.f32.mxu0 %v3629_v2 }
 0x6f0   :  { %3068 = vmatprep.subr.bf16.mxu0 %v3749_v47 }
 0x6f3   :  { %3070 = vmatpush1.bf16.msra.mxu0 %v3755_v57 }
 0x6f4   :  { %3072 = vmatprep.subr.bf16.mxu0 %v3763_v25 }
 0x6f7   :  { %3074 = vmatpush1.bf16.msra.mxu0 %v3768_v29 }
 0x6f8   :  { %3076 = vmatprep.subr.bf16.mxu0 %v3777_v38 }
 0x6fb   :  { %3078 = vmatpush1.bf16.msra.mxu0 %v3782_v44 }
 0x6fc   :  { %3080 = vmatprep.subr.bf16.mxu0 %v3743_v41 }
 0x7b1   :  { %v1323_v58 = vpop.f32.mrb[12].mxu1 }
 0x7b2   :  { %v2850_v8 = vmul.f32 -1.442695, %v1323_v58  ;;  %v1325_v9 = vpop.f32.mrb[13].mxu1 }
 0x7b3   :  { %v2851_v10 = vmul.f32 -1.442695, %v1325_v9 }
 0x7b4   :  { %3363 = vpow2.f32 %v2850_v8 }
 0x7b5   :  { %3365 = vpow2.f32 %v2851_v10 }
 0x7be   :  { %v3364_v12 = vpop.eup %3363 }
 0x7bf   :  { %v3366_v13 = vpop.eup %3365  ;;  %v1336_v18 = vadd.f32 1.0, %v3364_v12 }
 0x7c0   :  { %v1337_v16 = vadd.f32 1.0, %v3366_v13 }
 0x7c1   :  { %v1428_v17 = vpop.f32.mrb[0].mxu0 }
 0x7c2   :  { %3367 = vrcp.f32 %v1337_v16  ;;  %v1433_v19 = vadd.f32 %v1428_v17, %v3912_v23  ;;  %v1430_v20 = vpop.f32.mrb[1].mxu0 }
 0x7c3   :  { %v1434_v21 = vadd.f32 %v1430_v20, %v3914_v24  ;;  %3369 = vrcp.f32 %v1336_v18 }
 0x7c4   :  { %v2855_v59 = vmul.f32 -1.442695, %v1433_v19 }
 0x7c5   :  { %v2856_v60 = vmul.f32 -1.442695, %v1434_v21 }
 0x7c7   :  { %3371 = vpow2.f32 %v2856_v60 }
 0x7c8   :  { %3373 = vpow2.f32 %v2855_v59 }
 0x7cc   :  { %v3368_v22 = vpop.eup %3367 }
 0x7cd   :  { %v1343_v53 = vmul.f32 2.0, %v3368_v22  ;;  %v3370_v55 = vpop.eup %3369 }
 0x7ce   :  { %v1348_v9 = vmul.f32 %v3370_v55, %v4044_v50 }
 0x7cf   :  { %v2853_v54 = vadd.f32 -1.0, %v1343_v53 }
 0x7d1   :  { %v3372_v56 = vpop.eup %3371  ;;  %v1347_v11 = vsel %vm677_vm0, %v2853_v54, %v3368_v22 }
 0x7d2   :  { %v3374_v0 = vpop.eup %3373  ;;  %v1442_v61 = vadd.f32 1.0, %v3372_v56  ;;  %v1349_v63 = vmul.f32 %v3370_v55, %v1347_v11 }
 0x7d3   :  { %v1441_v23 = vadd.f32 1.0, %v3374_v0 }
 0x7d4   :  { %3375 = vrcp.f32 %v1442_v61  ;;  %1351 = vrot.lane.b32.xlu0 %v1349_v63, %s3631_s3 }
 0x7d5   :  { %3377 = vrcp.f32 %v1441_v23 }
 0x7de   :  { %v3376_v24 = vpop.eup %3375 }
 0x7df   :  { %v1448_v6 = vmul.f32 2.0, %v3376_v24  ;;  %v3378_v7 = vpop.eup %3377 }
 0x7e0   :  { %v1453_v17 = vmul.f32 %v3378_v7, %v4049_v62 }
 0x7e1   :  { %v2858_v15 = vadd.f32 -1.0, %v1448_v6 }
 0x7e3   :  { %v1452_v58 = vsel %vm677_vm0, %v2858_v15, %v3376_v24 }
 0x7e4   :  { %v1454_v8 = vmul.f32 %v3378_v7, %v1452_v58 }
 0x7e6   :  { %1456 = vrot.lane.b32.xlu1 %v1454_v8, %s3631_s3 }
 0x846   :  { %v1352_v10 = vpop.permute.xlu0 %1351 }
 0x847   :  { %v4073_v12 = vadd.f32 %v1352_v10, %v1348_v9 }
 0x849   :  { %3379 = vtanh.f32 %v4073_v12 }
 0x853   :  { %v3380_v13 = vpop.eup %3379 }
 0x854   :  { %v1356_v16 = vmul.f32 %v3380_v13, %v1347_v11 }
 0x856   :  { %1468 = vrot.lane.b32.xlu0 %v1356_v16, %s3631_s3 }
 0x858   :  { %v1457_v18 = vpop.permute.xlu1 %1456 }
 0x859   :  { %v4078_v19 = vadd.f32 %v1457_v18, %v1453_v17 }
 0x85b   :  { %3381 = vtanh.f32 %v4078_v19 }
 0x865   :  { %v3382_v20 = vpop.eup %3381 }
 0x866   :  { %v1461_v21 = vmul.f32 %v3382_v20, %v1452_v58 }
 0x868   :  { %1573 = vrot.lane.b32.xlu1 %v1461_v21, %s3631_s3 }
 0x8c8   :  { %v1469_v50 = vpop.permute.xlu0 %1468 }
 0x8c9   :  { %2859 = vmatmul.mubr.msk.f32.vlgmr.msra.gmra.mrb[2].mxu0 %vm684_vm6, %v1469_v50 }
 0x8ca   :  { %3082 = vmatpush1.bf16.msra.mxu0 %v3747_v46  ;;  %1641 = vmatprep.mubr.f32.mxu0 %v3629_v2 }
 0x8cb   :  { %3084 = vmatprep.subr.bf16.mxu0 %v3749_v47 }
 0x8ce   :  { %3086 = vmatpush1.bf16.msra.mxu0 %v3755_v57 }
 0x8cf   :  { %3088 = vmatprep.subr.bf16.mxu0 %v3763_v25 }
 0x8d2   :  { %3090 = vmatpush1.bf16.msra.mxu0 %v3768_v29 }
 0x8d3   :  { %3092 = vmatprep.subr.bf16.mxu0 %v3777_v38 }
 0x8d6   :  { %3094 = vmatpush1.bf16.msra.mxu0 %v3782_v44 }
 0x8d7   :  { %3096 = vmatprep.subr.bf16.mxu0 %v3743_v41 }
 0x8da   :  { %v1574_v62 = vpop.permute.xlu1 %1573 }
 0x8db   :  { %2864 = vmatmul.mubr.msk.f32.vlgmr.msra.gmra.mrb[4].mxu0 %vm684_vm6, %v1574_v62 }
 0x8dc   :  { %3098 = vmatpush1.bf16.msra.mxu0 %v3747_v46  ;;  %1751 = vmatprep.mubr.f32.mxu0 %v3629_v2 }
 0x8dd   :  { %3100 = vmatprep.subr.bf16.mxu0 %v3749_v47 }
 0x8e0   :  { %3102 = vmatpush1.bf16.msra.mxu0 %v3755_v57 }
 0x8e1   :  { %3104 = vmatprep.subr.bf16.mxu0 %v3763_v25 }
 0x8e4   :  { %3106 = vmatpush1.bf16.msra.mxu0 %v3768_v29 }
 0x8e5   :  { %3108 = vmatprep.subr.bf16.mxu0 %v3777_v38 }
 0x8e8   :  { %3110 = vmatpush1.bf16.msra.mxu0 %v3782_v44 }
 0x8e9   :  { %3112 = vmatprep.subr.bf16.mxu0 %v3743_v41 }
 0x99c   :  { %v1538_v59 = vpop.f32.mrb[2].mxu0 }
 0x99d   :  { %v1543_v60 = vadd.f32 %v1538_v59, %v3916_v26  ;;  %v1540_v22 = vpop.f32.mrb[3].mxu0 }
 0x99e   :  { %v1544_v53 = vadd.f32 %v1540_v22, %v3918_v27 }
 0x99f   :  { %v2860_v54 = vmul.f32 -1.442695, %v1543_v60 }
 0x9a0   :  { %v2861_v55 = vmul.f32 -1.442695, %v1544_v53 }
 0x9a1   :  { %3383 = vpow2.f32 %v2860_v54 }
 0x9a2   :  { %3385 = vpow2.f32 %v2861_v55 }
 0x9ab   :  { %v3384_v56 = vpop.eup %3383 }
 0x9ac   :  { %v3386_v11 = vpop.eup %3385  ;;  %v1551_v63 = vadd.f32 1.0, %v3384_v56 }
 0x9ad   :  { %v1552_v0 = vadd.f32 1.0, %v3386_v11 }
 0x9ae   :  { %v1643_v61 = vpop.f32.mrb[4].mxu0 }
 0x9af   :  { %3387 = vrcp.f32 %v1552_v0  ;;  %v1648_v23 = vadd.f32 %v1643_v61, %v3920_v28  ;;  %v1645_v24 = vpop.f32.mrb[5].mxu0 }
 0x9b0   :  { %v1649_v6 = vadd.f32 %v1645_v24, %v3922_v30  ;;  %3389 = vrcp.f32 %v1551_v63 }
 0x9b1   :  { %v2865_v15 = vmul.f32 -1.442695, %v1648_v23 }
 0x9b2   :  { %v2866_v26 = vmul.f32 -1.442695, %v1649_v6 }
 0x9b4   :  { %3391 = vpow2.f32 %v2866_v26 }
 0x9b5   :  { %3393 = vpow2.f32 %v2865_v15 }
 0x9b9   :  { %v3388_v27 = vpop.eup %3387 }
 0x9ba   :  { %v1558_v7 = vmul.f32 2.0, %v3388_v27  ;;  %v3390_v8 = vpop.eup %3389 }
 0x9bb   :  { %v1563_v59 = vmul.f32 %v3390_v8, %v4073_v12 }
 0x9bc   :  { %v2863_v58 = vadd.f32 -1.0, %v1558_v7 }
 0x9be   :  { %v3392_v9 = vpop.eup %3391  ;;  %v1562_v10 = vsel %vm677_vm0, %v2863_v58, %v3388_v27 }
 0x9bf   :  { %v3394_v13 = vpop.eup %3393  ;;  %v1657_v16 = vadd.f32 1.0, %v3392_v9  ;;  %v1564_v17 = vmul.f32 %v3390_v8, %v1562_v10 }
 0x9c0   :  { %v1656_v28 = vadd.f32 1.0, %v3394_v13 }
 0x9c1   :  { %3395 = vrcp.f32 %v1657_v16  ;;  %1566 = vrot.lane.b32.xlu0 %v1564_v17, %s3631_s3 }
 0x9c2   :  { %3397 = vrcp.f32 %v1656_v28 }
 0x9cb   :  { %v3396_v30 = vpop.eup %3395 }
 0x9cc   :  { %v1663_v18 = vmul.f32 2.0, %v3396_v30  ;;  %v3398_v21 = vpop.eup %3397 }
 0x9cd   :  { %v1668_v55 = vmul.f32 %v3398_v21, %v4078_v19 }
 0x9ce   :  { %v2868_v20 = vadd.f32 -1.0, %v1663_v18 }
 0x9d0   :  { %v1667_v50 = vsel %vm677_vm0, %v2868_v20, %v3396_v30 }
 0x9d1   :  { %v1669_v62 = vmul.f32 %v3398_v21, %v1667_v50 }
 0x9d3   :  { %1671 = vrot.lane.b32.xlu1 %v1669_v62, %s3631_s3 }
 0xa33   :  { %v1567_v60 = vpop.permute.xlu0 %1566 }
 0xa34   :  { %v4113_v22 = vadd.f32 %v1567_v60, %v1563_v59 }
 0xa36   :  { %3399 = vtanh.f32 %v4113_v22 }
 0xa40   :  { %v3400_v53 = vpop.eup %3399 }
 0xa41   :  { %v1571_v54 = vmul.f32 %v3400_v53, %v1562_v10 }
 0xa43   :  { %1683 = vrot.lane.b32.xlu0 %v1571_v54, %s3631_s3 }
 0xa45   :  { %v1672_v56 = vpop.permute.xlu1 %1671 }
 0xa46   :  { %v4118_v11 = vadd.f32 %v1672_v56, %v1668_v55 }
 0xa48   :  { %3401 = vtanh.f32 %v4118_v11 }
 0xa52   :  { %v3402_v0 = vpop.eup %3401 }
 0xa53   :  { %v1676_v61 = vmul.f32 %v3402_v0, %v1667_v50 }
 0xa55   :  { %1788 = vrot.lane.b32.xlu1 %v1676_v61, %s3631_s3 }
 0xab5   :  { %v1684_v12 = vpop.permute.xlu0 %1683 }
 0xab6   :  { %2869 = vmatmul.mubr.msk.f32.vlgmr.msra.gmra.mrb[6].mxu0 %vm684_vm6, %v1684_v12 }
 0xab7   :  { %3114 = vmatpush1.bf16.msra.mxu0 %v3747_v46  ;;  %1856 = vmatprep.mubr.f32.mxu0 %v3629_v2 }
 0xab8   :  { %3116 = vmatprep.subr.bf16.mxu0 %v3749_v47 }
 0xabb   :  { %3118 = vmatpush1.bf16.msra.mxu0 %v3755_v57 }
 0xabc   :  { %3120 = vmatprep.subr.bf16.mxu0 %v3763_v25 }
 0xabf   :  { %3122 = vmatpush1.bf16.msra.mxu0 %v3768_v29 }
 0xac0   :  { %3124 = vmatprep.subr.bf16.mxu0 %v3777_v38 }
 0xac3   :  { %3126 = vmatpush1.bf16.msra.mxu0 %v3782_v44 }
 0xac4   :  { %3128 = vmatprep.subr.bf16.mxu0 %v3743_v41 }
 0xac7   :  { %v1789_v19 = vpop.permute.xlu1 %1788 }
 0xac8   :  { %2874 = vmatmul.mubr.msk.f32.vlgmr.msra.gmra.mrb[8].mxu0 %vm684_vm6, %v1789_v19 }
 0xac9   :  { %3130 = vmatpush1.bf16.msra.mxu0 %v3747_v46  ;;  %1966 = vmatprep.mubr.f32.mxu0 %v3629_v2 }
 0xaca   :  { %3132 = vmatprep.subr.bf16.mxu0 %v3749_v47 }
 0xacd   :  { %3134 = vmatpush1.bf16.msra.mxu0 %v3755_v57 }
 0xace   :  { %3136 = vmatprep.subr.bf16.mxu0 %v3763_v25 }
 0xad1   :  { %3138 = vmatpush1.bf16.msra.mxu0 %v3768_v29 }
 0xad2   :  { %3140 = vmatprep.subr.bf16.mxu0 %v3777_v38 }
 0xad5   :  { %3142 = vmatpush1.bf16.msra.mxu0 %v3782_v44 }
 0xad6   :  { %3144 = vmatprep.subr.bf16.mxu0 %v3743_v41 }
 0xb89   :  { %v1753_v63 = vpop.f32.mrb[6].mxu0 }
 0xb8a   :  { %v1758_v23 = vadd.f32 %v1753_v63, %v3924_v31  ;;  %v1755_v24 = vpop.f32.mrb[7].mxu0 }
 0xb8b   :  { %v1759_v6 = vadd.f32 %v1755_v24, %v3926_v32 }
 0xb8c   :  { %v2870_v15 = vmul.f32 -1.442695, %v1758_v23 }
 0xb8d   :  { %v2871_v26 = vmul.f32 -1.442695, %v1759_v6 }
 0xb8e   :  { %3403 = vpow2.f32 %v2870_v15 }
 0xb8f   :  { %3405 = vpow2.f32 %v2871_v26 }
 0xb98   :  { %v3404_v27 = vpop.eup %3403 }
 0xb99   :  { %v3406_v7 = vpop.eup %3405  ;;  %v1766_v9 = vadd.f32 1.0, %v3404_v27 }
 0xb9a   :  { %v1767_v58 = vadd.f32 1.0, %v3406_v7 }
 0xb9b   :  { %v1858_v8 = vpop.f32.mrb[8].mxu0 }
 0xb9c   :  { %3407 = vrcp.f32 %v1767_v58  ;;  %v1863_v10 = vadd.f32 %v1858_v8, %v3928_v33  ;;  %v1860_v13 = vpop.f32.mrb[9].mxu0 }
 0xb9d   :  { %v1864_v16 = vadd.f32 %v1860_v13, %v3930_v34  ;;  %3409 = vrcp.f32 %v1766_v9 }
 0xb9e   :  { %v2875_v17 = vmul.f32 -1.442695, %v1863_v10 }
 0xb9f   :  { %v2876_v31 = vmul.f32 -1.442695, %v1864_v16 }
 0xba1   :  { %3411 = vpow2.f32 %v2876_v31 }
 0xba2   :  { %3413 = vpow2.f32 %v2875_v17 }
 0xba6   :  { %v3408_v32 = vpop.eup %3407 }
 0xba7   :  { %v1773_v28 = vmul.f32 2.0, %v3408_v32  ;;  %v3410_v18 = vpop.eup %3409 }
 0xba8   :  { %v1778_v0 = vmul.f32 %v3410_v18, %v4113_v22 }
 0xba9   :  { %v2873_v30 = vadd.f32 -1.0, %v1773_v28 }
 0xbab   :  { %v3412_v20 = vpop.eup %3411  ;;  %v1777_v21 = vsel %vm677_vm0, %v2873_v30, %v3408_v32 }
 0xbac   :  { %v3414_v50 = vpop.eup %3413  ;;  %v1872_v62 = vadd.f32 1.0, %v3412_v20  ;;  %v1779_v59 = vmul.f32 %v3410_v18, %v1777_v21 }
 0xbad   :  { %v1871_v33 = vadd.f32 1.0, %v3414_v50 }
 0xbae   :  { %3415 = vrcp.f32 %v1872_v62  ;;  %1781 = vrot.lane.b32.xlu0 %v1779_v59, %s3631_s3 }
 0xbaf   :  { %3417 = vrcp.f32 %v1871_v33 }
 0xbb8   :  { %v3416_v34 = vpop.eup %3415 }
 0xbb9   :  { %v1878_v60 = vmul.f32 2.0, %v3416_v34  ;;  %v3418_v54 = vpop.eup %3417 }
 0xbba   :  { %v1883_v23 = vmul.f32 %v3418_v54, %v4118_v11 }
 0xbbb   :  { %v2878_v53 = vadd.f32 -1.0, %v1878_v60 }
 0xbbd   :  { %v1882_v55 = vsel %vm677_vm0, %v2878_v53, %v3416_v34 }
 0xbbe   :  { %v1884_v56 = vmul.f32 %v3418_v54, %v1882_v55 }
 0xbc0   :  { %1886 = vrot.lane.b32.xlu1 %v1884_v56, %s3631_s3 }
 0xc20   :  { %v1782_v61 = vpop.permute.xlu0 %1781 }
 0xc21   :  { %v4153_v12 = vadd.f32 %v1782_v61, %v1778_v0 }
 0xc23   :  { %3419 = vtanh.f32 %v4153_v12 }
 0xc2d   :  { %v3420_v19 = vpop.eup %3419 }
 0xc2e   :  { %v1786_v63 = vmul.f32 %v3420_v19, %v1777_v21 }
 0xc30   :  { %1898 = vrot.lane.b32.xlu0 %v1786_v63, %s3631_s3 }
 0xc32   :  { %v1887_v24 = vpop.permute.xlu1 %1886 }
 0xc33   :  { %v4158_v6 = vadd.f32 %v1887_v24, %v1883_v23 }
 0xc35   :  { %3421 = vtanh.f32 %v4158_v6 }
 0xc3f   :  { %v3422_v15 = vpop.eup %3421 }
 0xc40   :  { %v1891_v26 = vmul.f32 %v3422_v15, %v1882_v55 }
 0xc42   :  { %2003 = vrot.lane.b32.xlu1 %v1891_v26, %s3631_s3 }
 0xca2   :  { %v1899_v22 = vpop.permute.xlu0 %1898 }
 0xca3   :  { %2879 = vmatmul.mubr.msk.f32.vlgmr.msra.gmra.mrb[10].mxu0 %vm684_vm6, %v1899_v22 }
 0xca4   :  { %3146 = vmatpush1.bf16.msra.mxu0 %v3747_v46  ;;  %2071 = vmatprep.mubr.f32.mxu0 %v3629_v2 }
 0xca5   :  { %3148 = vmatprep.subr.bf16.mxu0 %v3749_v47 }
 0xca8   :  { %3150 = vmatpush1.bf16.msra.mxu0 %v3755_v57 }
 0xca9   :  { %3152 = vmatprep.subr.bf16.mxu0 %v3763_v25 }
 0xcac   :  { %3154 = vmatpush1.bf16.msra.mxu0 %v3768_v29 }
 0xcad   :  { %3156 = vmatprep.subr.bf16.mxu0 %v3777_v38 }
 0xcb0   :  { %3158 = vmatpush1.bf16.msra.mxu0 %v3782_v44 }
 0xcb1   :  { %3160 = vmatprep.subr.bf16.mxu0 %v3743_v41 }
 0xcb4   :  { %v2004_v11 = vpop.permute.xlu1 %2003 }
 0xcb5   :  { %2884 = vmatmul.mubr.msk.f32.vlgmr.msra.gmra.mrb[12].mxu0 %vm684_vm6, %v2004_v11 }
 0xcb6   :  { %3162 = vmatpush1.bf16.msra.mxu0 %v3747_v46  ;;  %2181 = vmatprep.mubr.f32.mxu0 %v3629_v2 }
 0xcb7   :  { %3164 = vmatprep.subr.bf16.mxu0 %v3749_v47 }
 0xcba   :  { %3166 = vmatpush1.bf16.msra.mxu0 %v3755_v57 }
 0xcbb   :  { %3168 = vmatprep.subr.bf16.mxu0 %v3763_v25 }
 0xcbe   :  { %3170 = vmatpush1.bf16.msra.mxu0 %v3768_v29 }
 0xcbf   :  { %3172 = vmatprep.subr.bf16.mxu0 %v3777_v38 }
 0xcc2   :  { %3174 = vmatpush1.bf16.msra.mxu0 %v3782_v44 }
 0xcc3   :  { %3176 = vmatprep.subr.bf16.mxu0 %v3743_v41 }
 0xd76   :  { %v1968_v27 = vpop.f32.mrb[10].mxu0 }
 0xd77   :  { %v1973_v7 = vadd.f32 %v1968_v27, %v3932_v35  ;;  %v1970_v58 = vpop.f32.mrb[11].mxu0 }
 0xd78   :  { %v1974_v8 = vadd.f32 %v1970_v58, %v3934_v36 }
 0xd79   :  { %v2880_v9 = vmul.f32 -1.442695, %v1973_v7 }
 0xd7a   :  { %v2881_v10 = vmul.f32 -1.442695, %v1974_v8 }
 0xd7b   :  { %3423 = vpow2.f32 %v2880_v9 }
 0xd7c   :  { %3425 = vpow2.f32 %v2881_v10 }
 0xd85   :  { %v3424_v13 = vpop.eup %3423 }
 0xd86   :  { %v3426_v16 = vpop.eup %3425  ;;  %v1981_v32 = vadd.f32 1.0, %v3424_v13 }
 0xd87   :  { %v1982_v17 = vadd.f32 1.0, %v3426_v16 }
 0xd88   :  { %v2073_v31 = vpop.f32.mrb[12].mxu0 }
 0xd89   :  { %3427 = vrcp.f32 %v1982_v17  ;;  %v2078_v28 = vadd.f32 %v2073_v31, %v3936_v37  ;;  %v2075_v30 = vpop.f32.mrb[13].mxu0 }
 0xd8a   :  { %v2079_v18 = vadd.f32 %v2075_v30, %v3938_v39  ;;  %3429 = vrcp.f32 %v1981_v32 }
 0xd8b   :  { %v2885_v20 = vmul.f32 -1.442695, %v2078_v28 }
 0xd8c   :  { %v2886_v35 = vmul.f32 -1.442695, %v2079_v18 }
 0xd8e   :  { %3431 = vpow2.f32 %v2886_v35 }
 0xd8f   :  { %3433 = vpow2.f32 %v2885_v20 }
 0xd93   :  { %v3428_v36 = vpop.eup %3427 }
 0xd94   :  { %v1988_v21 = vmul.f32 2.0, %v3428_v36  ;;  %v3430_v62 = vpop.eup %3429 }
 0xd95   :  { %v1993_v19 = vmul.f32 %v3430_v62, %v4153_v12 }
 0xd96   :  { %v2883_v50 = vadd.f32 -1.0, %v1988_v21 }
 0xd98   :  { %v3432_v59 = vpop.eup %3431  ;;  %v1992_v33 = vsel %vm677_vm0, %v2883_v50, %v3428_v36 }
 0xd99   :  { %v3434_v34 = vpop.eup %3433  ;;  %v2087_v60 = vadd.f32 1.0, %v3432_v59  ;;  %v1994_v53 = vmul.f32 %v3430_v62, %v1992_v33 }
 0xd9a   :  { %v2086_v37 = vadd.f32 1.0, %v3434_v34 }
 0xd9b   :  { %3435 = vrcp.f32 %v2087_v60  ;;  %1996 = vrot.lane.b32.xlu0 %v1994_v53, %s3631_s3 }
 0xd9c   :  { %3437 = vrcp.f32 %v2086_v37 }
 0xda5   :  { %v3436_v39 = vpop.eup %3435 }
 0xda6   :  { %v2093_v54 = vmul.f32 2.0, %v3436_v39  ;;  %v3438_v56 = vpop.eup %3437 }
 0xda7   :  { %v2098_v26 = vmul.f32 %v3438_v56, %v4158_v6 }
 0xda8   :  { %v2888_v55 = vadd.f32 -1.0, %v2093_v54 }
 0xdaa   :  { %v2097_v0 = vsel %vm677_vm0, %v2888_v55, %v3436_v39 }
 0xdab   :  { %v2099_v61 = vmul.f32 %v3438_v56, %v2097_v0 }
 0xdad   :  { %2101 = vrot.lane.b32.xlu1 %v2099_v61, %s3631_s3 }
 0xe0d   :  { %v1997_v63 = vpop.permute.xlu0 %1996 }
 0xe0e   :  { %v4193_v23 = vadd.f32 %v1997_v63, %v1993_v19 }
 0xe10   :  { %3439 = vtanh.f32 %v4193_v23 }
 0xe1a   :  { %v3440_v24 = vpop.eup %3439 }
 0xe1b   :  { %v2001_v15 = vmul.f32 %v3440_v24, %v1992_v33 }
 0xe1d   :  { %2113 = vrot.lane.b32.xlu0 %v2001_v15, %s3631_s3 }
 0xe1f   :  { %v2102_v22 = vpop.permute.xlu1 %2101 }
 0xe20   :  { %v4198_v11 = vadd.f32 %v2102_v22, %v2098_v26 }
 0xe22   :  { %3441 = vtanh.f32 %v4198_v11 }
 0xe2c   :  { %v3442_v27 = vpop.eup %3441 }
 0xe2d   :  { %v2106_v7 = vmul.f32 %v3442_v27, %v2097_v0 }
 0xe2f   :  { %2218 = vrot.lane.b32.xlu1 %v2106_v7, %s3631_s3 }
 0xe8f   :  { %v2114_v12 = vpop.permute.xlu0 %2113 }
 0xe90   :  { %2889 = vmatmul.mubr.msk.f32.vlgmr.msra.gmra.mrb[14].mxu0 %vm684_vm6, %v2114_v12 }
 0xe91   :  { %3178 = vmatpush1.bf16.msra.mxu0 %v3747_v46  ;;  %2286 = vmatprep.mubr.f32.mxu0 %v3629_v2 }
 0xe92   :  { %3180 = vmatprep.subr.bf16.mxu0 %v3749_v47 }
 0xe95   :  { %3182 = vmatpush1.bf16.msra.mxu0 %v3755_v57 }
 0xe96   :  { %3184 = vmatprep.subr.bf16.mxu0 %v3763_v25 }
 0xe99   :  { %3186 = vmatpush1.bf16.msra.mxu0 %v3768_v29 }
 0xe9a   :  { %3188 = vmatprep.subr.bf16.mxu0 %v3777_v38 }
 0xe9d   :  { %3190 = vmatpush1.bf16.msra.mxu0 %v3782_v44 }
 0xe9e   :  { %3192 = vmatprep.subr.bf16.mxu0 %v3743_v41 }
 0xea1   :  { %v2219_v6 = vpop.permute.xlu1 %2218 }
 0xea2   :  { %2894 = vmatmul.mubr.msk.f32.vlgmr.msra.gmra.mrb[16].mxu0 %vm684_vm6, %v2219_v6 }
 0xea3   :  { %3194 = vmatpush1.bf16.msra.mxu0 %v3747_v46  ;;  %2396 = vmatprep.mubr.f32.mxu0 %v3629_v2 }
 0xea4   :  { %3196 = vmatprep.subr.bf16.mxu0 %v3749_v47 }
 0xea7   :  { %3198 = vmatpush1.bf16.msra.mxu0 %v3755_v57 }
 0xea8   :  { %3200 = vmatprep.subr.bf16.mxu0 %v3763_v25 }
 0xeab   :  { %3202 = vmatpush1.bf16.msra.mxu0 %v3768_v29 }
 0xeac   :  { %3204 = vmatprep.subr.bf16.mxu0 %v3777_v38 }
 0xeaf   :  { %3206 = vmatpush1.bf16.msra.mxu0 %v3782_v44 }
 0xeb0   :  { %3208 = vmatprep.subr.bf16.mxu0 %v3743_v41 }
 0xf63   :  { %v2183_v58 = vpop.f32.mrb[14].mxu0 }
 0xf64   :  { %v2188_v8 = vadd.f32 %v2183_v58, %v3940_v40  ;;  %v2185_v9 = vpop.f32.mrb[15].mxu0 }
 0xf65   :  { %v2189_v10 = vadd.f32 %v2185_v9, %v3942_v42 }
 0xf66   :  { %v2890_v13 = vmul.f32 -1.442695, %v2188_v8 }
 0xf67   :  { %v2891_v16 = vmul.f32 -1.442695, %v2189_v10 }
 0xf68   :  { %3443 = vpow2.f32 %v2890_v13 }
 0xf69   :  { %3445 = vpow2.f32 %v2891_v16 }
 0xf72   :  { %v3444_v17 = vpop.eup %3443 }
 0xf73   :  { %v3446_v31 = vpop.eup %3445  ;;  %v2196_v30 = vadd.f32 1.0, %v3444_v17 }
 0xf74   :  { %v2197_v32 = vadd.f32 1.0, %v3446_v31 }
 0xf75   :  { %v2288_v28 = vpop.f32.mrb[16].mxu0 }
 0xf76   :  { %3447 = vrcp.f32 %v2197_v32  ;;  %v2293_v18 = vadd.f32 %v2288_v28, %v3944_v43  ;;  %v2290_v20 = vpop.f32.mrb[17].mxu0 }
 0xf77   :  { %v2294_v35 = vadd.f32 %v2290_v20, %v3946_v45  ;;  %3449 = vrcp.f32 %v2196_v30 }
 0xf78   :  { %v2895_v36 = vmul.f32 -1.442695, %v2293_v18 }
 0xf79   :  { %v2896_v40 = vmul.f32 -1.442695, %v2294_v35 }
 0xf7b   :  { %3451 = vpow2.f32 %v2896_v40 }
 0xf7c   :  { %3453 = vpow2.f32 %v2895_v36 }
 0xf80   :  { %v3448_v42 = vpop.eup %3447 }
 0xf81   :  { %v2203_v21 = vmul.f32 2.0, %v3448_v42  ;;  %v3450_v62 = vpop.eup %3449 }
 0xf82   :  { %v2208_v0 = vmul.f32 %v3450_v62, %v4193_v23 }
 0xf83   :  { %v2893_v50 = vadd.f32 -1.0, %v2203_v21 }
 0xf85   :  { %v3452_v59 = vpop.eup %3451  ;;  %v2207_v33 = vsel %vm677_vm0, %v2893_v50, %v3448_v42 }
 0xf86   :  { %v3454_v34 = vpop.eup %3453  ;;  %v2302_v60 = vadd.f32 1.0, %v3452_v59  ;;  %v2209_v53 = vmul.f32 %v3450_v62, %v2207_v33 }
 0xf87   :  { %v2301_v43 = vadd.f32 1.0, %v3454_v34 }
 0xf88   :  { %3455 = vrcp.f32 %v2302_v60  ;;  %2211 = vrot.lane.b32.xlu0 %v2209_v53, %s3631_s3 }
 0xf89   :  { %3457 = vrcp.f32 %v2301_v43 }
 0xf92   :  { %v3456_v45 = vpop.eup %3455 }
 0xf93   :  { %v2308_v37 = vmul.f32 2.0, %v3456_v45  ;;  %v3458_v54 = vpop.eup %3457 }
 0xf94   :  { %v2313_v15 = vmul.f32 %v3458_v54, %v4198_v11 }
 0xf95   :  { %v2898_v39 = vadd.f32 -1.0, %v2308_v37 }
 0xf97   :  { %v2312_v55 = vsel %vm677_vm0, %v2898_v39, %v3456_v45 }
 0xf98   :  { %v2314_v56 = vmul.f32 %v3458_v54, %v2312_v55 }
 0xf9a   :  { %2316 = vrot.lane.b32.xlu1 %v2314_v56, %s3631_s3 }
 0xffa   :  { %v2212_v61 = vpop.permute.xlu0 %2211 }
 0xffb   :  { %v4233_v19 = vadd.f32 %v2212_v61, %v2208_v0 }
 0xffd   :  { %3459 = vtanh.f32 %v4233_v19 }
0x1007   :  { %v3460_v63 = vpop.eup %3459 }
0x1008   :  { %v2216_v24 = vmul.f32 %v3460_v63, %v2207_v33 }
0x100a   :  { %2328 = vrot.lane.b32.xlu0 %v2216_v24, %s3631_s3 }
0x100c   :  { %v2317_v26 = vpop.permute.xlu1 %2316 }
0x100d   :  { %v4238_v22 = vadd.f32 %v2317_v26, %v2313_v15 }
0x100f   :  { %3461 = vtanh.f32 %v4238_v22 }
0x1019   :  { %v3462_v27 = vpop.eup %3461 }
0x101a   :  { %v2321_v7 = vmul.f32 %v3462_v27, %v2312_v55 }
0x101c   :  { %2433 = vrot.lane.b32.xlu1 %v2321_v7, %s3631_s3 }
0x107c   :  { %v2329_v23 = vpop.permute.xlu0 %2328 }
0x107d   :  { %2899 = vmatmul.mubr.msk.f32.vlgmr.msra.gmra.mrb[18].mxu0 %vm684_vm6, %v2329_v23 }
0x107e   :  { %3210 = vmatpush1.bf16.msra.mxu0 %v3747_v46  ;;  %2501 = vmatprep.mubr.f32.mxu0 %v3629_v2 }
0x107f   :  { %3212 = vmatprep.subr.bf16.mxu0 %v3749_v47 }
0x1082   :  { %3214 = vmatpush1.bf16.msra.mxu0 %v3755_v57 }
0x1083   :  { %3216 = vmatprep.subr.bf16.mxu0 %v3763_v25 }
0x1086   :  { %3218 = vmatpush1.bf16.msra.mxu0 %v3768_v29 }
0x1087   :  { %3220 = vmatprep.subr.bf16.mxu0 %v3777_v38 }
0x108a   :  { %3222 = vmatpush1.bf16.msra.mxu0 %v3782_v44 }
0x108b   :  { %3224 = vmatprep.subr.bf16.mxu0 %v3743_v41 }
0x108e   :  { %v2434_v11 = vpop.permute.xlu1 %2433 }
0x108f   :  { %2904 = vmatmul.mubr.msk.f32.vlgmr.msra.gmra.mrb[20].mxu0 %vm684_vm6, %v2434_v11 }
0x1090   :  { %3226 = vmatpush1.bf16.msra.mxu0 %v3747_v46  ;;  %2611 = vmatprep.mubr.f32.mxu0 %v3629_v2 }
0x1091   :  { %3228 = vmatprep.subr.bf16.mxu0 %v3749_v47 }
0x1094   :  { %3230 = vmatpush1.bf16.msra.mxu0 %v3755_v57 }
0x1095   :  { %3232 = vmatprep.subr.bf16.mxu0 %v3763_v25 }
0x1098   :  { %3234 = vmatpush1.bf16.msra.mxu0 %v3768_v29 }
0x1099   :  { %3236 = vmatprep.subr.bf16.mxu0 %v3777_v38 }
0x109c   :  { %3238 = vmatpush1.bf16.msra.mxu0 %v3782_v44 }
0x109d   :  { %3240 = vmatprep.subr.bf16.mxu0 %v3743_v41 }
0x1150   :  { %v2398_v12 = vpop.f32.mrb[18].mxu0 }
0x1151   :  { %v2403_v6 = vadd.f32 %v2398_v12, %v3948_v1  ;;  %v2400_v58 = vpop.f32.mrb[19].mxu0 }
0x1152   :  { %v2404_v8 = vadd.f32 %v2400_v58, %v3950_v4 }
0x1153   :  { %v2900_v9 = vmul.f32 -1.442695, %v2403_v6 }
0x1154   :  { %v2901_v10 = vmul.f32 -1.442695, %v2404_v8 }
0x1155   :  { %3463 = vpow2.f32 %v2900_v9 }
0x1156   :  { %3465 = vpow2.f32 %v2901_v10 }
0x115f   :  { %v3464_v13 = vpop.eup %3463 }
0x1160   :  { %v3466_v16 = vpop.eup %3465  ;;  %v2411_v32 = vadd.f32 1.0, %v3464_v13 }
0x1161   :  { %v2412_v17 = vadd.f32 1.0, %v3466_v16 }
0x1162   :  { %v2503_v31 = vpop.f32.mrb[20].mxu0 }
0x1163   :  { %3467 = vrcp.f32 %v2412_v17  ;;  %v2508_v28 = vadd.f32 %v2503_v31, %v3952_v5  ;;  %v2505_v30 = vpop.f32.mrb[21].mxu0 }
0x1164   :  { %v2509_v41 = vadd.f32 %v2505_v30, %v3954_v48  ;;  %3469 = vrcp.f32 %v2411_v32 }
0x1165   :  { %v2905_v18 = vmul.f32 -1.442695, %v2508_v28 }
0x1166   :  { %v2906_v1 = vmul.f32 -1.442695, %v2509_v41 }
0x1168   :  { %3471 = vpow2.f32 %v2906_v1 }
0x1169   :  { %3473 = vpow2.f32 %v2905_v18 }
0x116d   :  { %v3468_v4 = vpop.eup %3467 }
0x116e   :  { %v2418_v20 = vmul.f32 2.0, %v3468_v4  ;;  %v3470_v36 = vpop.eup %3469 }
0x116f   :  { %v2423_v43 = vmul.f32 %v3470_v36, %v4233_v19 }
0x1170   :  { %v2903_v35 = vadd.f32 -1.0, %v2418_v20 }
0x1172   :  { %v3472_v40 = vpop.eup %3471  ;;  %v2422_v42 = vsel %vm677_vm0, %v2903_v35, %v3468_v4 }
0x1173   :  { %v3474_v21 = vpop.eup %3473  ;;  %v2517_v50 = vadd.f32 1.0, %v3472_v40  ;;  %v2424_v62 = vmul.f32 %v3470_v36, %v2422_v42 }
0x1174   :  { %v2516_v5 = vadd.f32 1.0, %v3474_v21 }
0x1175   :  { %3475 = vrcp.f32 %v2517_v50  ;;  %2426 = vrot.lane.b32.xlu0 %v2424_v62, %s3631_s3 }
0x1176   :  { %3477 = vrcp.f32 %v2516_v5 }
0x117f   :  { %v3476_v48 = vpop.eup %3475 }
0x1180   :  { %v2523_v59 = vmul.f32 2.0, %v3476_v48  ;;  %v3478_v34 = vpop.eup %3477 }
0x1181   :  { %v2528_v55 = vmul.f32 %v3478_v34, %v4238_v22 }
0x1182   :  { %v2908_v33 = vadd.f32 -1.0, %v2523_v59 }
0x1184   :  { %v2527_v60 = vsel %vm677_vm0, %v2908_v33, %v3476_v48 }
0x1185   :  { %v2529_v53 = vmul.f32 %v3478_v34, %v2527_v60 }
0x1187   :  { %2531 = vrot.lane.b32.xlu1 %v2529_v53, %s3631_s3 }
0x11e7   :  { %v2427_v45 = vpop.permute.xlu0 %2426 }
0x11e8   :  { %v4273_v37 = vadd.f32 %v2427_v45, %v2423_v43 }
0x11ea   :  { %3479 = vtanh.f32 %v4273_v37 }
0x11f4   :  { %v3480_v39 = vpop.eup %3479 }
0x11f5   :  { %v2431_v54 = vmul.f32 %v3480_v39, %v2422_v42 }
0x11f7   :  { %2543 = vrot.lane.b32.xlu0 %v2431_v54, %s3631_s3 }
0x11f9   :  { %v2532_v56 = vpop.permute.xlu1 %2531 }
0x11fa   :  { %v4278_v0 = vadd.f32 %v2532_v56, %v2528_v55 }
0x11fc   :  { %3481 = vtanh.f32 %v4278_v0 }
0x1206   :  { %v3482_v61 = vpop.eup %3481 }
0x1207   :  { %v2536_v63 = vmul.f32 %v3482_v61, %v2527_v60 }
0x1209   :  { %2648 = vrot.lane.b32.xlu1 %v2536_v63, %s3631_s3 }
0x1269   :  { %v2544_v19 = vpop.permute.xlu0 %2543 }
0x126a   :  { %2909 = vmatmul.mubr.msk.f32.vlgmr.msra.gmra.mrb[22].mxu0 %vm684_vm6, %v2544_v19 }
0x126b   :  { %3242 = vmatpush1.bf16.msra.mxu0 %v3747_v46  ;;  %2716 = vmatprep.mubr.f32.mxu0 %v3629_v2 }
0x126c   :  { %3244 = vmatprep.subr.bf16.mxu0 %v3749_v47 }
0x126f   :  { %3246 = vmatpush1.bf16.msra.mxu0 %v3755_v57 }
0x1270   :  { %3248 = vmatprep.subr.bf16.mxu0 %v3763_v25 }
0x1273   :  { %3250 = vmatpush1.bf16.msra.mxu0 %v3768_v29 }
0x1274   :  { %3252 = vmatprep.subr.bf16.mxu0 %v3777_v38 }
0x1277   :  { %3254 = vmatpush1.bf16.msra.mxu0 %v3782_v44 }
0x127b   :  { %v2649_v24 = vpop.permute.xlu1 %2648 }
0x127c   :  { %2914 = vmatmul.mubr.msk.f32.vlgmr.msra.gmra.mrb[24].mxu0 %vm684_vm6, %v2649_v24 }
0x133d   :  { %v2613_v15 = vpop.f32.mrb[22].mxu0 }
0x133e   :  { %v2618_v46 = vadd.f32 %v2613_v15, %v3956_v49  ;;  %v2615_v26 = vpop.f32.mrb[23].mxu0 }
0x133f   :  { %v2619_v2 = vadd.f32 %v2615_v26, %v3958_v51 }
0x1340   :  { %v2910_v47 = vmul.f32 -1.442695, %v2618_v46 }
0x1341   :  { %v2911_v22 = vmul.f32 -1.442695, %v2619_v2 }
0x1342   :  { %3483 = vpow2.f32 %v2910_v47 }
0x1343   :  { %3485 = vpow2.f32 %v2911_v22 }
0x134c   :  { %v3484_v57 = vpop.eup %3483 }
0x134d   :  { %v3486_v25 = vpop.eup %3485  ;;  %v2626_v38 = vadd.f32 1.0, %v3484_v57 }
0x134e   :  { %v2627_v29 = vadd.f32 1.0, %v3486_v25 }
0x134f   :  { %v2718_v27 = vpop.f32.mrb[24].mxu0 }
0x1350   :  { %3487 = vrcp.f32 %v2627_v29  ;;  %v2723_v44 = vadd.f32 %v2718_v27, %v3960_v52  ;;  %v2720_v7 = vpop.f32.mrb[25].mxu0 }
0x1351   :  { %v2724_v23 = vadd.f32 %v2720_v7, %v3962_v3  ;;  %3489 = vrcp.f32 %v2626_v38 }
0x1352   :  { %v2915_v11 = vmul.f32 -1.442695, %v2723_v44 }
0x1353   :  { %v2916_v49 = vmul.f32 -1.442695, %v2724_v23 }
0x1355   :  { %3491 = vpow2.f32 %v2916_v49 }
0x1356   :  { %3493 = vpow2.f32 %v2915_v11 }
0x135a   :  { %v3488_v51 = vpop.eup %3487 }
0x135b   :  { %v2633_v12 = vmul.f32 2.0, %v3488_v51  ;;  %v3490_v58 = vpop.eup %3489 }
0x135c   :  { %v2638_v41 = vmul.f32 %v3490_v58, %v4273_v37 }
0x135d   :  { %v2913_v6 = vadd.f32 -1.0, %v2633_v12 }
0x135f   :  { %v3492_v8 = vpop.eup %3491  ;;  %v2637_v9 = vsel %vm677_vm0, %v2913_v6, %v3488_v51 }
0x1360   :  { %v3494_v10 = vpop.eup %3493  ;;  %v2732_v13 = vadd.f32 1.0, %v3492_v8  ;;  %v2639_v16 = vmul.f32 %v3490_v58, %v2637_v9 }
0x1361   :  { %v2731_v52 = vadd.f32 1.0, %v3494_v10 }
0x1362   :  { %3495 = vrcp.f32 %v2732_v13  ;;  %2641 = vrot.lane.b32.xlu0 %v2639_v16, %s3631_s3 }
0x1363   :  { %3497 = vrcp.f32 %v2731_v52 }
0x136c   :  { %v3496_v3 = vpop.eup %3495 }
0x136d   :  { %v2738_v17 = vmul.f32 2.0, %v3496_v3  ;;  %v3498_v32 = vpop.eup %3497 }
0x136e   :  { %v2743_v35 = vmul.f32 %v3498_v32, %v4278_v0 }
0x136f   :  { %v2918_v31 = vadd.f32 -1.0, %v2738_v17 }
0x1371   :  { %v2742_v28 = vsel %vm677_vm0, %v2918_v31, %v3496_v3 }
0x1372   :  { %v2744_v30 = vmul.f32 %v3498_v32, %v2742_v28 }
0x1374   :  { %2746 = vrot.lane.b32.xlu1 %v2744_v30, %s3631_s3 }
0x13d4   :  { %v2642_v18 = vpop.permute.xlu0 %2641 }
0x13d5   :  { %v2644_v1 = vadd.f32 %v2642_v18, %v2638_v41 }
0x13d7   :  { %3499 = vtanh.f32 %v2644_v1 }
0x13e1   :  { %v3500_v4 = vpop.eup %3499 }
0x13e2   :  { %v2646_v20 = vmul.f32 %v3500_v4, %v2637_v9 }
0x13e4   :  { %2754 = vrot.lane.b32.xlu0 %v2646_v20, %s3631_s3 }
0x13e6   :  { %v2747_v36 = vpop.permute.xlu1 %2746 }
0x13e7   :  { %v2749_v40 = vadd.f32 %v2747_v36, %v2743_v35 }
0x13e9   :  { %3501 = vtanh.f32 %v2749_v40 }
0x13f3   :  { %v3502_v42 = vpop.eup %3501 }
0x13f4   :  { %v2751_v14 = vmul.f32 %v3502_v42, %v2742_v28 }
0x13f6   :  { %2756 = vrot.lane.b32.xlu1 %v2751_v14, %s3631_s3 }
0x1456   :  { %v2755_v21 = vpop.permute.xlu0 %2754 }
0x1457   :  { %2760 = vst.msk [vmem:[#allocation11] sm:$0xff] %vm684_vm6, %v2755_v21 }
0x1468   :  { %v2757_v50 = vpop.permute.xlu1 %2756 }
0x1469   :  { %2761 = vst.msk [vmem:[#allocation11 + $0x8] sm:$0xff] %vm684_vm6, %v2757_v50 }
0x146a   :  { %3602 = shalt.err (!%p3599_p8)
}
0x146b   :  { %s3603_s19 = scalar_lea.hbm %s4327_s4, 256 }
0x146c   :  { %p3604_p9 = scmp.ne.s32.totalorder %s4327_s4, %s3603_s19  ;;  %p3607_p10 = scmp.lt.u32.totalorder %s3603_s19, %s4327_s4 }
0x146e   :  { %p3609_p11 = pnand %p3607_p10, %p3604_p9 }
0x1470   :  { %3612 = shalt.err (!%p3609_p11)
}
0x1471   :  { %2773 = dma.vmem_to_hbm [thread:$0]  %s2768_s14, 256, %s4327_s4, [#allocation5], %s3623_s27, %s3623_s27, %s3624_s28  }
0x1472   :  { %3619 = dma.done.wait [#allocation5], 256  }
0x1473   :  { %3620 = vsyncadd [#allocation5], 4294967040 }
0x1474   :  { %2777 = vsyncpa [#allocation4], 1 }
0x1475   :  { %2778 = vsyncpa [#allocation7], 1 }
0x1476   :  { %2779 = vsyncpa [#allocation10], 1 }
0x1477   :  { %2780 = vsyncpa [#allocation5], 1 }

</bundles_post_ra>
